<compile_context>
chip_gen: v7x
topology: tpu7x:2x2x1
jax: 0.10.0
libtpu: 0.0.40
codegen_flags: <defaults>
</compile_context>

<pallas_src>
import math

import jax
import jax.numpy as jnp
from jax import lax
from jax.experimental import pallas as pl
from jax.experimental.pallas import tpu as pltpu

# ----------------------------- config (small) ------------------------------
BATCH = 2
SEQ = 8
HIDDEN = 32
NUM_HEADS = 2
HEAD_DIM = HIDDEN // NUM_HEADS
INTERMEDIATE = 64
NUM_LAYERS = 2
VOCAB = 30          # valid token ids are [0, VOCAB)
VOCAB_PAD = 32      # padded embedding-table rows (rows >= VOCAB never selected)
MAX_POS = 16
CLASS_NUM = 8
POOLING_STYLE = "max"   # TorchModel pooling_style ('max' or 'avg')
LN_EPS = 1e-12          # BERT default
NEG_INF = -1.0e9

BS = BATCH * SEQ
ATTN_SCALE = 1.0 / math.sqrt(HEAD_DIM)

# ------------------------ packed-slab layout constants ----------------------
MATS_PER_LAYER = 6        # wq, wk, wv, wo, w1, w2
VECS_PER_LAYER = 10       # bq, bk, bv, bo, ln1_g, ln1_b, b1, b2, ln2_g, ln2_b
MAT_CLS = NUM_LAYERS * MATS_PER_LAYER          # classifier weight index
N_MATS = MAT_CLS + 1
VEC_EMB_LN_G, VEC_EMB_LN_B = 0, 1
VEC_LAYER0 = 2
VEC_CLS_B = VEC_LAYER0 + NUM_LAYERS * VECS_PER_LAYER
MAT_ROWS = max(HIDDEN, INTERMEDIATE)           # 64
MAT_COLS = max(HIDDEN, INTERMEDIATE, CLASS_NUM)  # 64
VEC_COLS = MAT_COLS                            # 64


# --------------------------- in-kernel helpers ------------------------------
def _vrow(vec_ref, row, width):
    """One packed bias/LN vector as a (1, width) block (static slice)."""
    return vec_ref[row:row + 1, :width]


def _layernorm(x, g, b):
    mu = jnp.mean(x, axis=-1, keepdims=True)
    xc = x - mu
    var = jnp.mean(xc * xc, axis=-1, keepdims=True)
    return xc * lax.rsqrt(var + LN_EPS) * g + b


def _erf_approx(x):
    # Abramowitz & Stegun 7.1.26 (max abs err ~1.5e-7): tracks HF BERT's exact
    # erf GELU far better than the tanh approximation (VPU + EUP ops only).
    sgn = jnp.where(x >= 0.0, 1.0, -1.0)
    ax = x * sgn
    t = 1.0 / (1.0 + 0.3275911 * ax)
    poly = ((((1.061405429 * t - 1.453152027) * t + 1.421413741) * t
             - 0.284496736) * t + 0.254829592) * t
    return sgn * (1.0 - poly * jnp.exp(-ax * ax))


def _gelu(x):
    return 0.5 * x * (1.0 + _erf_approx(x * 0.7071067811865476))


def _encoder_layer(h, wmat_ref, vec_ref, li, head_masks, batch_mask_stacked):
    mb = li * MATS_PER_LAYER
    vb = VEC_LAYER0 + li * VECS_PER_LAYER

    def w(i, rows, cols):
        return wmat_ref[mb + i, :rows, :cols]     # aligned (origin) static slice

    # Q/K/V: three aligned (H, H) matmuls -> no lane slicing of a fused result.
    q = jnp.dot(h, w(0, HIDDEN, HIDDEN), preferred_element_type=jnp.float32) \
        + _vrow(vec_ref, vb + 0, HIDDEN)
    k = jnp.dot(h, w(1, HIDDEN, HIDDEN), preferred_element_type=jnp.float32) \
        + _vrow(vec_ref, vb + 1, HIDDEN)
    v = jnp.dot(h, w(2, HIDDEN, HIDDEN), preferred_element_type=jnp.float32) \
        + _vrow(vec_ref, vb + 2, HIDDEN)

    # Heads separated with constant lane masks (VPU), batches with an additive
    # block-diagonal mask -> one stacked score matmul, one softmax, NUM_HEADS
    # PV matmuls; no per-head lane slices / concatenates (no XLU relayout).
    q_stacked = jnp.concatenate([q * m for m in head_masks], axis=0)   # (NH*BS, H)
    s = lax.dot_general(q_stacked, k, (((1,), (1,)), ((), ())),
                        preferred_element_type=jnp.float32)            # (NH*BS, BS)
    s = s * ATTN_SCALE + batch_mask_stacked
    s = s - jnp.max(s, axis=-1, keepdims=True)
    p = jnp.exp(s)
    p = p / jnp.sum(p, axis=-1, keepdims=True)                          # exact softmax

    ctx = None
    for hh in range(NUM_HEADS):
        part = jnp.dot(p[hh * BS:(hh + 1) * BS, :],                     # sublane-aligned
                       v * head_masks[hh],
                       preferred_element_type=jnp.float32)              # (BS, H)
        ctx = part if ctx is None else ctx + part

    attn = jnp.dot(ctx, w(3, HIDDEN, HIDDEN), preferred_element_type=jnp.float32) \
        + _vrow(vec_ref, vb + 3, HIDDEN)
    h1 = _layernorm(attn + h,
                    _vrow(vec_ref, vb + 4, HIDDEN), _vrow(vec_ref, vb + 5, HIDDEN))

    ff = _gelu(jnp.dot(h1, w(4, HIDDEN, INTERMEDIATE),
                       preferred_element_type=jnp.float32)
               + _vrow(vec_ref, vb + 6, INTERMEDIATE))
    ff = jnp.dot(ff, w(5, INTERMEDIATE, HIDDEN), preferred_element_type=jnp.float32) \
        + _vrow(vec_ref, vb + 7, HIDDEN)
    return _layernorm(ff + h1,
                      _vrow(vec_ref, vb + 8, HIDDEN), _vrow(vec_ref, vb + 9, HIDDEN))


# ------------------------------ fused kernel --------------------------------
def _model_kernel(ids_ref, emb_ref, wmat_ref, vec_ref, o_ref):
    # Constant masks, built once and reused by every layer.
    lane = lax.broadcasted_iota(jnp.int32, (1, HIDDEN), 1)
    head_masks = [
        jnp.logical_and(lane >= hh * HEAD_DIM, lane < (hh + 1) * HEAD_DIM
                        ).astype(jnp.float32)
        for hh in range(NUM_HEADS)
    ]
    row = lax.broadcasted_iota(jnp.int32, (BS, BS), 0)
    col = lax.broadcasted_iota(jnp.int32, (BS, BS), 1)
    same = None
    for b in range(BATCH):
        rb = jnp.logical_and(row >= b * SEQ, row < (b + 1) * SEQ)
        cb = jnp.logical_and(col >= b * SEQ, col < (b + 1) * SEQ)
        blk = jnp.logical_and(rb, cb)
        same = blk if same is None else jnp.logical_or(same, blk)
    batch_mask = jnp.where(same, 0.0, NEG_INF).astype(jnp.float32)       # (BS, BS)
    batch_mask_stacked = jnp.concatenate([batch_mask] * NUM_HEADS, axis=0)

    # BERT embeddings: one-hot gather against VMEM-resident table, add the
    # pre-tiled pos/type rows packed in the same slab, then LayerNorm.
    # (Ids outside [0, VOCAB_PAD) map to a zero embedding; relies on input range.)
    ids = ids_ref[...]                                                   # (BS, 1) int32
    onehot = (lax.broadcasted_iota(jnp.int32, (BS, VOCAB_PAD), 1) == ids
              ).astype(jnp.float32)                                      # (BS, VOCAB_PAD)
    word = jnp.dot(onehot, emb_ref[:VOCAB_PAD, :],
                   preferred_element_type=jnp.float32)
    emb = word + emb_ref[VOCAB_PAD:VOCAB_PAD + BS, :]                    # + pos + type
    h = _layernorm(emb, _vrow(vec_ref, VEC_EMB_LN_G, HIDDEN),
                   _vrow(vec_ref, VEC_EMB_LN_B, HIDDEN))

    # Encoder layers (unrolled); keep the last two hidden states.
    prev = h
    for li in range(NUM_LAYERS):
        nxt = _encoder_layer(h, wmat_ref, vec_ref, li, head_masks, batch_mask_stacked)
        prev, h = h, nxt

    mid = prev + h            # BertMidLayer: hidden_states[-2] + hidden_states[-1]

    # Pooling over sequence (per batch, sublane-aligned slices) + classifier.
    pooled = []
    for b in range(BATCH):
        blk = mid[b * SEQ:(b + 1) * SEQ, :]
        if POOLING_STYLE == "max":
            pooled.append(jnp.max(blk, axis=0, keepdims=True))
        else:
            pooled.append(jnp.mean(blk, axis=0, keepdims=True))
    pooled = jnp.concatenate(pooled, axis=0)                             # (B, H)

    logits = jnp.dot(pooled, wmat_ref[MAT_CLS, :HIDDEN, :CLASS_NUM],
                     preferred_element_type=jnp.float32) \
        + _vrow(vec_ref, VEC_CLS_B, CLASS_NUM)
    o_ref[...] = logits.astype(o_ref.dtype)


# ------------------------------ wrapper --------------------------------------
@jax.jit
def torch_model_forward(x, emb, wmat, vec):
    ids = x.reshape(-1, 1).astype(jnp.int32)
    vmem = pl.BlockSpec(memory_space=pltpu.MemorySpace.VMEM)
    return pl.pallas_call(
        _model_kernel,
        out_shape=jax.ShapeDtypeStruct((BATCH, CLASS_NUM), jnp.float32),
        in_specs=[vmem, vmem, vmem, vmem],
        out_specs=vmem,
    )(ids, emb, wmat, vec)


# ------------------------------ param init ----------------------------------
def init_params(key):
    keys = iter(jax.random.split(key, 64))

    def normal(shape, scale=0.02):
        return scale * jax.random.normal(next(keys), shape, jnp.float32)

    def gamma(shape):
        return 1.0 + 0.05 * jax.random.normal(next(keys), shape, jnp.float32)

    raw = {
        "word_emb": normal((VOCAB_PAD, HIDDEN)),   # rows >= VOCAB never selected
        "pos_emb": normal((MAX_POS, HIDDEN)),
        "type_emb": normal((2, HIDDEN)),
        "emb_ln_g": gamma((HIDDEN,)),
        "emb_ln_b": normal((HIDDEN,)),
        "layers": [],
    }
    for _ in range(NUM_LAYERS):
        lp = {
            "wq": normal((HIDDEN, HIDDEN)), "wk": normal((HIDDEN, HIDDEN)),
            "wv": normal((HIDDEN, HIDDEN)), "wo": normal((HIDDEN, HIDDEN)),
            "w1": normal((HIDDEN, INTERMEDIATE)), "w2": normal((INTERMEDIATE, HIDDEN)),
            "bq": normal((HIDDEN,)), "bk": normal((HIDDEN,)),
            "bv": normal((HIDDEN,)), "bo": normal((HIDDEN,)),
            "ln1_g": gamma((HIDDEN,)), "ln1_b": normal((HIDDEN,)),
            "b1": normal((INTERMEDIATE,)), "b2": normal((HIDDEN,)),
            "ln2_g": gamma((HIDDEN,)), "ln2_b": normal((HIDDEN,)),
        }
        raw["layers"].append(lp)
    raw["cls_w"] = normal((HIDDEN, CLASS_NUM))
    raw["cls_b"] = normal((CLASS_NUM,))

    # ---- pack everything ONCE at init time into the kernel's slabs ----------
    def pad_mat(w):
        buf = jnp.zeros((MAT_ROWS, MAT_COLS), jnp.float32)
        return buf.at[:w.shape[0], :w.shape[1]].set(w)

    def pad_vec(v):
        buf = jnp.zeros((VEC_COLS,), jnp.float32)
        return buf.at[:v.shape[0]].set(v)

    mats, vecs = [], []
    vecs.append(pad_vec(raw["emb_ln_g"]))
    vecs.append(pad_vec(raw["emb_ln_b"]))
    for lp in raw["layers"]:
        mats += [pad_mat(lp[n]) for n in ("wq", "wk", "wv", "wo", "w1", "w2")]
        vecs += [pad_vec(lp[n]) for n in ("bq", "bk", "bv", "bo", "ln1_g", "ln1_b",
                                          "b1", "b2", "ln2_g", "ln2_b")]
    mats.append(pad_mat(raw["cls_w"]))
    vecs.append(pad_vec(raw["cls_b"]))
    while len(vecs) % 8:                     # round vector rows to a sublane multiple
        vecs.append(jnp.zeros((VEC_COLS,), jnp.float32))

    # pos+type embeddings precomputed and pre-tiled (review item): no per-call tile.
    pos_type = raw["pos_emb"][:SEQ] + raw["type_emb"][0][None, :]        # (S, H)
    emb_slab = jnp.concatenate([raw["word_emb"], jnp.tile(pos_type, (BATCH, 1))], axis=0)

    return {"emb": emb_slab, "wmat": jnp.stack(mats), "vec": jnp.stack(vecs), "raw": raw}


# --------------------- pure-JAX reference (correctness) ----------------------
def reference_forward(x, raw):
    b, s = x.shape
    ids = x.reshape(-1)

    def ln(v, g, bb):
        mu = jnp.mean(v, axis=-1, keepdims=True)
        vc = v - mu
        var = jnp.mean(vc * vc, axis=-1, keepdims=True)
        return vc * lax.rsqrt(var + LN_EPS) * g + bb

    def gelu(v):
        return 0.5 * v * (1.0 + lax.erf(v * 0.7071067811865476))

    emb = raw["word_emb"][ids] + jnp.tile(raw["pos_emb"][:s] + raw["type_emb"][0][None, :],
                                          (b, 1))
    h = ln(emb, raw["emb_ln_g"], raw["emb_ln_b"])
    hidden = [h]
    for lp in raw["layers"]:
        q = h @ lp["wq"] + lp["bq"]
        k = h @ lp["wk"] + lp["bk"]
        v = h @ lp["wv"] + lp["bv"]

        def split(t):
            return t.reshape(b, s, NUM_HEADS, HEAD_DIM).transpose(0, 2, 1, 3)

        qh, kh, vh = split(q), split(k), split(v)
        sc = jnp.einsum("bhqd,bhkd->bhqk", qh, kh) * ATTN_SCALE
        p = jax.nn.softmax(sc, axis=-1)
        ctx = jnp.einsum("bhqk,bhkd->bhqd", p, vh).transpose(0, 2, 1, 3).reshape(b * s, HIDDEN)
        attn = ctx @ lp["wo"] + lp["bo"]
        h1 = ln(attn + h, lp["ln1_g"], lp["ln1_b"])
        ff = gelu(h1 @ lp["w1"] + lp["b1"])
        ff = ff @ lp["w2"] + lp["b2"]
        h = ln(ff + h1, lp["ln2_g"], lp["ln2_b"])
        hidden.append(h)

    mid = (hidden[-2] + hidden[-1]).reshape(b, s, HIDDEN)
    pooled = mid.max(axis=1) if POOLING_STYLE == "max" else mid.mean(axis=1)
    return pooled @ raw["cls_w"] + raw["cls_b"]


# --------------------------------- main --------------------------------------
if __name__ == "__main__":
    key = jax.random.PRNGKey(0)
    k_params, k_x = jax.random.split(key)
    params = init_params(k_params)
    # TODO(synk): BertModel.from_pretrained checkpoint loading has no Pallas
    # equivalent; weights are deterministic random stand-ins with identical structure.
    x = jax.random.randint(k_x, (BATCH, SEQ), 0, VOCAB, dtype=jnp.int32)

    out = torch_model_forward(x, params["emb"], params["wmat"], params["vec"])
    out = jax.block_until_ready(out)

    assert out.shape == (BATCH, CLASS_NUM), out.shape
    assert out.dtype == jnp.float32

    ref = jax.block_until_ready(reference_forward(x, params["raw"]))
    err = float(jnp.max(jnp.abs(out - ref)))
    assert err < 1e-3, f"kernel vs pure-JAX reference max abs err = {err}"

    print("KERNEL_OK")
</pallas_src>

<mosaic_0001>
module attributes {stable_mosaic.version = 11 : i64} {
  func.func @_model_kernel(%arg0: memref<16x1xi32, #tpu.memory_space<vmem>>, %arg1: memref<48x32xf32, #tpu.memory_space<vmem>>, %arg2: memref<13x64x64xf32, #tpu.memory_space<vmem>>, %arg3: memref<24x64xf32, #tpu.memory_space<vmem>>, %arg4: memref<2x8xf32, #tpu.memory_space<vmem>>) attributes {dimension_semantics = [], scalar_prefetch = 0 : i64, scratch_operands = 0 : i64, tpu.core_type = #tpu.core_type<tc>} {
    %0 = tpu.iota {dimensions = array<i32: 1>} : vector<1x32xi32>
    %c0_i32 = arith.constant 0 : i32
    %1 = vector.broadcast %c0_i32 : i32 to vector<1x32xi32>
    %2 = arith.cmpi sge, %0, %1 : vector<1x32xi32>
    %c16_i32 = arith.constant 16 : i32
    %3 = vector.broadcast %c16_i32 : i32 to vector<1x32xi32>
    %4 = arith.cmpi slt, %0, %3 : vector<1x32xi32>
    %5 = arith.andi %2, %4 : vector<1x32xi1>
    %6 = arith.extui %5 : vector<1x32xi1> to vector<1x32xi32>
    %7 = arith.sitofp %6 : vector<1x32xi32> to vector<1x32xf32>
    %c16_i32_0 = arith.constant 16 : i32
    %8 = vector.broadcast %c16_i32_0 : i32 to vector<1x32xi32>
    %9 = arith.cmpi sge, %0, %8 : vector<1x32xi32>
    %c32_i32 = arith.constant 32 : i32
    %10 = vector.broadcast %c32_i32 : i32 to vector<1x32xi32>
    %11 = arith.cmpi slt, %0, %10 : vector<1x32xi32>
    %12 = arith.andi %9, %11 : vector<1x32xi1>
    %13 = arith.extui %12 : vector<1x32xi1> to vector<1x32xi32>
    %14 = arith.sitofp %13 : vector<1x32xi32> to vector<1x32xf32>
    %15 = tpu.iota {dimensions = array<i32: 0>} : vector<16x16xi32>
    %16 = tpu.iota {dimensions = array<i32: 1>} : vector<16x16xi32>
    %c0_i32_1 = arith.constant 0 : i32
    %17 = vector.broadcast %c0_i32_1 : i32 to vector<16x16xi32>
    %18 = arith.cmpi sge, %15, %17 : vector<16x16xi32>
    %c8_i32 = arith.constant 8 : i32
    %19 = vector.broadcast %c8_i32 : i32 to vector<16x16xi32>
    %20 = arith.cmpi slt, %15, %19 : vector<16x16xi32>
    %21 = arith.andi %18, %20 : vector<16x16xi1>
    %c0_i32_2 = arith.constant 0 : i32
    %22 = vector.broadcast %c0_i32_2 : i32 to vector<16x16xi32>
    %23 = arith.cmpi sge, %16, %22 : vector<16x16xi32>
    %c8_i32_3 = arith.constant 8 : i32
    %24 = vector.broadcast %c8_i32_3 : i32 to vector<16x16xi32>
    %25 = arith.cmpi slt, %16, %24 : vector<16x16xi32>
    %26 = arith.andi %23, %25 : vector<16x16xi1>
    %27 = arith.andi %21, %26 : vector<16x16xi1>
    %c8_i32_4 = arith.constant 8 : i32
    %28 = vector.broadcast %c8_i32_4 : i32 to vector<16x16xi32>
    %29 = arith.cmpi sge, %15, %28 : vector<16x16xi32>
    %c16_i32_5 = arith.constant 16 : i32
    %30 = vector.broadcast %c16_i32_5 : i32 to vector<16x16xi32>
    %31 = arith.cmpi slt, %15, %30 : vector<16x16xi32>
    %32 = arith.andi %29, %31 : vector<16x16xi1>
    %c8_i32_6 = arith.constant 8 : i32
    %33 = vector.broadcast %c8_i32_6 : i32 to vector<16x16xi32>
    %34 = arith.cmpi sge, %16, %33 : vector<16x16xi32>
    %c16_i32_7 = arith.constant 16 : i32
    %35 = vector.broadcast %c16_i32_7 : i32 to vector<16x16xi32>
    %36 = arith.cmpi slt, %16, %35 : vector<16x16xi32>
    %37 = arith.andi %34, %36 : vector<16x16xi1>
    %38 = arith.andi %32, %37 : vector<16x16xi1>
    %39 = arith.ori %27, %38 : vector<16x16xi1>
    %cst = arith.constant 0.000000e+00 : f32
    %cst_8 = arith.constant -1.000000e+09 : f32
    %40 = vector.broadcast %cst : f32 to vector<16x16xf32>
    %41 = vector.broadcast %cst_8 : f32 to vector<16x16xf32>
    %42 = arith.select %39, %40, %41 : vector<16x16xi1>, vector<16x16xf32>
    %43 = tpu.concatenate %42, %42 in 0 : vector<16x16xf32>, vector<16x16xf32> -> vector<32x16xf32>
    %c0 = arith.constant 0 : index
    %c0_9 = arith.constant 0 : index
    %44 = vector.load %arg0[%c0, %c0_9] : memref<16x1xi32, #tpu.memory_space<vmem>>, vector<16x1xi32>
    %45 = tpu.iota {dimensions = array<i32: 1>} : vector<16x32xi32>
    %46 = vector.broadcast %44 : vector<16x1xi32> to vector<16x32xi32>
    %47 = arith.cmpi eq, %45, %46 : vector<16x32xi32>
    %48 = arith.extui %47 : vector<16x32xi1> to vector<16x32xi32>
    %49 = arith.sitofp %48 : vector<16x32xi32> to vector<16x32xf32>
    %c0_10 = arith.constant 0 : index
    %c0_11 = arith.constant 0 : index
    %50 = vector.load %arg1[%c0_10, %c0_11] : memref<48x32xf32, #tpu.memory_space<vmem>>, vector<32x32xf32>
    %cst_12 = arith.constant dense<0.000000e+00> : vector<16x32xf32>
    %51 = tpu.matmul %49, %50, %cst_12 {dimension_numbers = #tpu.dot_dimension_numbers<[1], [0], [0], [1], [0, 0, 1, 1], [], []>} : vector<16x32xf32>, vector<32x32xf32>, vector<16x32xf32> -> vector<16x32xf32>
    %c32 = arith.constant 32 : index
    %c0_13 = arith.constant 0 : index
    %52 = vector.load %arg1[%c32, %c0_13] : memref<48x32xf32, #tpu.memory_space<vmem>>, vector<16x32xf32>
    %53 = arith.addf %51, %52 : vector<16x32xf32>
    %c0_14 = arith.constant 0 : index
    %c0_15 = arith.constant 0 : index
    %54 = vector.load %arg3[%c0_14, %c0_15] : memref<24x64xf32, #tpu.memory_space<vmem>>, vector<1x32xf32>
    %c1 = arith.constant 1 : index
    %c0_16 = arith.constant 0 : index
    %55 = vector.load %arg3[%c1, %c0_16] : memref<24x64xf32, #tpu.memory_space<vmem>>, vector<1x32xf32>
    %cst_17 = arith.constant dense<0.000000e+00> : vector<16xf32>
    %56 = vector.multi_reduction <add>, %53, %cst_17 [1] : vector<16x32xf32> to vector<16xf32>
    %57 = vector.shape_cast %56 : vector<16xf32> to vector<16x1xf32>
    %cst_18 = arith.constant 3.200000e+01 : f32
    %58 = vector.broadcast %cst_18 : f32 to vector<16x1xf32>
    %59 = arith.divf %57, %58 : vector<16x1xf32>
    %60 = vector.broadcast %59 : vector<16x1xf32> to vector<16x32xf32>
    %61 = arith.subf %53, %60 : vector<16x32xf32>
    %62 = arith.mulf %61, %61 : vector<16x32xf32>
    %cst_19 = arith.constant dense<0.000000e+00> : vector<16xf32>
    %63 = vector.multi_reduction <add>, %62, %cst_19 [1] : vector<16x32xf32> to vector<16xf32>
    %64 = vector.shape_cast %63 : vector<16xf32> to vector<16x1xf32>
    %cst_20 = arith.constant 3.200000e+01 : f32
    %65 = vector.broadcast %cst_20 : f32 to vector<16x1xf32>
    %66 = arith.divf %64, %65 : vector<16x1xf32>
    %cst_21 = arith.constant 9.99999996E-13 : f32
    %67 = vector.broadcast %cst_21 : f32 to vector<16x1xf32>
    %68 = arith.addf %66, %67 : vector<16x1xf32>
    %69 = math.rsqrt %68 : vector<16x1xf32>
    %70 = vector.broadcast %69 : vector<16x1xf32> to vector<16x32xf32>
    %71 = arith.mulf %61, %70 : vector<16x32xf32>
    %72 = vector.broadcast %54 : vector<1x32xf32> to vector<16x32xf32>
    %73 = arith.mulf %71, %72 : vector<16x32xf32>
    %74 = vector.broadcast %55 : vector<1x32xf32> to vector<16x32xf32>
    %75 = arith.addf %73, %74 : vector<16x32xf32>
    %c0_22 = arith.constant 0 : index
    %c0_23 = arith.constant 0 : index
    %c0_24 = arith.constant 0 : index
    %76 = vector.load %arg2[%c0_22, %c0_23, %c0_24] : memref<13x64x64xf32, #tpu.memory_space<vmem>>, vector<1x32x32xf32>
    %77 = vector.shape_cast %76 : vector<1x32x32xf32> to vector<32x32xf32>
    %cst_25 = arith.constant dense<0.000000e+00> : vector<16x32xf32>
    %78 = tpu.matmul %75, %77, %cst_25 {dimension_numbers = #tpu.dot_dimension_numbers<[1], [0], [0], [1], [0, 0, 1, 1], [], []>} : vector<16x32xf32>, vector<32x32xf32>, vector<16x32xf32> -> vector<16x32xf32>
    %c2 = arith.constant 2 : index
    %c0_26 = arith.constant 0 : index
    %79 = vector.load %arg3[%c2, %c0_26] : memref<24x64xf32, #tpu.memory_space<vmem>>, vector<1x32xf32>
    %80 = vector.broadcast %79 : vector<1x32xf32> to vector<16x32xf32>
    %81 = arith.addf %78, %80 : vector<16x32xf32>
    %c1_27 = arith.constant 1 : index
    %c0_28 = arith.constant 0 : index
    %c0_29 = arith.constant 0 : index
    %82 = vector.load %arg2[%c1_27, %c0_28, %c0_29] : memref<13x64x64xf32, #tpu.memory_space<vmem>>, vector<1x32x32xf32>
    %83 = vector.shape_cast %82 : vector<1x32x32xf32> to vector<32x32xf32>
    %cst_30 = arith.constant dense<0.000000e+00> : vector<16x32xf32>
    %84 = tpu.matmul %75, %83, %cst_30 {dimension_numbers = #tpu.dot_dimension_numbers<[1], [0], [0], [1], [0, 0, 1, 1], [], []>} : vector<16x32xf32>, vector<32x32xf32>, vector<16x32xf32> -> vector<16x32xf32>
    %c3 = arith.constant 3 : index
    %c0_31 = arith.constant 0 : index
    %85 = vector.load %arg3[%c3, %c0_31] : memref<24x64xf32, #tpu.memory_space<vmem>>, vector<1x32xf32>
    %86 = vector.broadcast %85 : vector<1x32xf32> to vector<16x32xf32>
    %87 = arith.addf %84, %86 : vector<16x32xf32>
    %c2_32 = arith.constant 2 : index
    %c0_33 = arith.constant 0 : index
    %c0_34 = arith.constant 0 : index
    %88 = vector.load %arg2[%c2_32, %c0_33, %c0_34] : memref<13x64x64xf32, #tpu.memory_space<vmem>>, vector<1x32x32xf32>
    %89 = vector.shape_cast %88 : vector<1x32x32xf32> to vector<32x32xf32>
    %cst_35 = arith.constant dense<0.000000e+00> : vector<16x32xf32>
    %90 = tpu.matmul %75, %89, %cst_35 {dimension_numbers = #tpu.dot_dimension_numbers<[1], [0], [0], [1], [0, 0, 1, 1], [], []>} : vector<16x32xf32>, vector<32x32xf32>, vector<16x32xf32> -> vector<16x32xf32>
    %c4 = arith.constant 4 : index
    %c0_36 = arith.constant 0 : index
    %91 = vector.load %arg3[%c4, %c0_36] : memref<24x64xf32, #tpu.memory_space<vmem>>, vector<1x32xf32>
    %92 = vector.broadcast %91 : vector<1x32xf32> to vector<16x32xf32>
    %93 = arith.addf %90, %92 : vector<16x32xf32>
    %94 = vector.broadcast %7 : vector<1x32xf32> to vector<16x32xf32>
    %95 = arith.mulf %81, %94 : vector<16x32xf32>
    %96 = vector.broadcast %14 : vector<1x32xf32> to vector<16x32xf32>
    %97 = arith.mulf %81, %96 : vector<16x32xf32>
    %98 = tpu.concatenate %95, %97 in 0 : vector<16x32xf32>, vector<16x32xf32> -> vector<32x32xf32>
    %cst_37 = arith.constant dense<0.000000e+00> : vector<32x16xf32>
    %99 = tpu.matmul %98, %87, %cst_37 {dimension_numbers = #tpu.dot_dimension_numbers<[1], [1], [0], [0], [0, 0, 1, 0], [], []>} : vector<32x32xf32>, vector<16x32xf32>, vector<32x16xf32> -> vector<32x16xf32>
    %cst_38 = arith.constant 2.500000e-01 : f32
    %100 = vector.broadcast %cst_38 : f32 to vector<32x16xf32>
    %101 = arith.mulf %99, %100 : vector<32x16xf32>
    %102 = arith.addf %101, %43 : vector<32x16xf32>
    %cst_39 = arith.constant dense<0xFF800000> : vector<32xf32>
    %103 = vector.multi_reduction <maximumf>, %102, %cst_39 [1] : vector<32x16xf32> to vector<32xf32>
    %104 = vector.shape_cast %103 : vector<32xf32> to vector<32x1xf32>
    %105 = vector.broadcast %104 : vector<32x1xf32> to vector<32x16xf32>
    %106 = arith.subf %102, %105 : vector<32x16xf32>
    %107 = math.exp %106 : vector<32x16xf32>
    %cst_40 = arith.constant dense<0.000000e+00> : vector<32xf32>
    %108 = vector.multi_reduction <add>, %107, %cst_40 [1] : vector<32x16xf32> to vector<32xf32>
    %109 = vector.shape_cast %108 : vector<32xf32> to vector<32x1xf32>
    %110 = vector.broadcast %109 : vector<32x1xf32> to vector<32x16xf32>
    %111 = arith.divf %107, %110 : vector<32x16xf32>
    %112 = vector.extract_strided_slice %111 {offsets = [0, 0], sizes = [16, 16], strides = [1, 1]} : vector<32x16xf32> to vector<16x16xf32>
    %113 = vector.broadcast %7 : vector<1x32xf32> to vector<16x32xf32>
    %114 = arith.mulf %93, %113 : vector<16x32xf32>
    %cst_41 = arith.constant dense<0.000000e+00> : vector<16x32xf32>
    %115 = tpu.matmul %112, %114, %cst_41 {dimension_numbers = #tpu.dot_dimension_numbers<[1], [0], [0], [1], [0, 0, 1, 1], [], []>} : vector<16x16xf32>, vector<16x32xf32>, vector<16x32xf32> -> vector<16x32xf32>
    %116 = vector.extract_strided_slice %111 {offsets = [16, 0], sizes = [16, 16], strides = [1, 1]} : vector<32x16xf32> to vector<16x16xf32>
    %117 = vector.broadcast %14 : vector<1x32xf32> to vector<16x32xf32>
    %118 = arith.mulf %93, %117 : vector<16x32xf32>
    %cst_42 = arith.constant dense<0.000000e+00> : vector<16x32xf32>
    %119 = tpu.matmul %116, %118, %cst_42 {dimension_numbers = #tpu.dot_dimension_numbers<[1], [0], [0], [1], [0, 0, 1, 1], [], []>} : vector<16x16xf32>, vector<16x32xf32>, vector<16x32xf32> -> vector<16x32xf32>
    %120 = arith.addf %115, %119 : vector<16x32xf32>
    %c3_43 = arith.constant 3 : index
    %c0_44 = arith.constant 0 : index
    %c0_45 = arith.constant 0 : index
    %121 = vector.load %arg2[%c3_43, %c0_44, %c0_45] : memref<13x64x64xf32, #tpu.memory_space<vmem>>, vector<1x32x32xf32>
    %122 = vector.shape_cast %121 : vector<1x32x32xf32> to vector<32x32xf32>
    %cst_46 = arith.constant dense<0.000000e+00> : vector<16x32xf32>
    %123 = tpu.matmul %120, %122, %cst_46 {dimension_numbers = #tpu.dot_dimension_numbers<[1], [0], [0], [1], [0, 0, 1, 1], [], []>} : vector<16x32xf32>, vector<32x32xf32>, vector<16x32xf32> -> vector<16x32xf32>
    %c5 = arith.constant 5 : index
    %c0_47 = arith.constant 0 : index
    %124 = vector.load %arg3[%c5, %c0_47] : memref<24x64xf32, #tpu.memory_space<vmem>>, vector<1x32xf32>
    %125 = vector.broadcast %124 : vector<1x32xf32> to vector<16x32xf32>
    %126 = arith.addf %123, %125 : vector<16x32xf32>
    %127 = arith.addf %126, %75 : vector<16x32xf32>
    %c6 = arith.constant 6 : index
    %c0_48 = arith.constant 0 : index
    %128 = vector.load %arg3[%c6, %c0_48] : memref<24x64xf32, #tpu.memory_space<vmem>>, vector<1x32xf32>
    %c7 = arith.constant 7 : index
    %c0_49 = arith.constant 0 : index
    %129 = vector.load %arg3[%c7, %c0_49] : memref<24x64xf32, #tpu.memory_space<vmem>>, vector<1x32xf32>
    %cst_50 = arith.constant dense<0.000000e+00> : vector<16xf32>
    %130 = vector.multi_reduction <add>, %127, %cst_50 [1] : vector<16x32xf32> to vector<16xf32>
    %131 = vector.shape_cast %130 : vector<16xf32> to vector<16x1xf32>
    %cst_51 = arith.constant 3.200000e+01 : f32
    %132 = vector.broadcast %cst_51 : f32 to vector<16x1xf32>
    %133 = arith.divf %131, %132 : vector<16x1xf32>
    %134 = vector.broadcast %133 : vector<16x1xf32> to vector<16x32xf32>
    %135 = arith.subf %127, %134 : vector<16x32xf32>
    %136 = arith.mulf %135, %135 : vector<16x32xf32>
    %cst_52 = arith.constant dense<0.000000e+00> : vector<16xf32>
    %137 = vector.multi_reduction <add>, %136, %cst_52 [1] : vector<16x32xf32> to vector<16xf32>
    %138 = vector.shape_cast %137 : vector<16xf32> to vector<16x1xf32>
    %cst_53 = arith.constant 3.200000e+01 : f32
    %139 = vector.broadcast %cst_53 : f32 to vector<16x1xf32>
    %140 = arith.divf %138, %139 : vector<16x1xf32>
    %cst_54 = arith.constant 9.99999996E-13 : f32
    %141 = vector.broadcast %cst_54 : f32 to vector<16x1xf32>
    %142 = arith.addf %140, %141 : vector<16x1xf32>
    %143 = math.rsqrt %142 : vector<16x1xf32>
    %144 = vector.broadcast %143 : vector<16x1xf32> to vector<16x32xf32>
    %145 = arith.mulf %135, %144 : vector<16x32xf32>
    %146 = vector.broadcast %128 : vector<1x32xf32> to vector<16x32xf32>
    %147 = arith.mulf %145, %146 : vector<16x32xf32>
    %148 = vector.broadcast %129 : vector<1x32xf32> to vector<16x32xf32>
    %149 = arith.addf %147, %148 : vector<16x32xf32>
    %c4_55 = arith.constant 4 : index
    %c0_56 = arith.constant 0 : index
    %c0_57 = arith.constant 0 : index
    %150 = vector.load %arg2[%c4_55, %c0_56, %c0_57] : memref<13x64x64xf32, #tpu.memory_space<vmem>>, vector<1x32x64xf32>
    %151 = vector.shape_cast %150 : vector<1x32x64xf32> to vector<32x64xf32>
    %cst_58 = arith.constant dense<0.000000e+00> : vector<16x64xf32>
    %152 = tpu.matmul %149, %151, %cst_58 {dimension_numbers = #tpu.dot_dimension_numbers<[1], [0], [0], [1], [0, 0, 1, 1], [], []>} : vector<16x32xf32>, vector<32x64xf32>, vector<16x64xf32> -> vector<16x64xf32>
    %c8 = arith.constant 8 : index
    %c0_59 = arith.constant 0 : index
    %153 = vector.load %arg3[%c8, %c0_59] : memref<24x64xf32, #tpu.memory_space<vmem>>, vector<1x64xf32>
    %154 = vector.broadcast %153 : vector<1x64xf32> to vector<16x64xf32>
    %155 = arith.addf %152, %154 : vector<16x64xf32>
    %cst_60 = arith.constant 5.000000e-01 : f32
    %156 = vector.broadcast %cst_60 : f32 to vector<16x64xf32>
    %157 = arith.mulf %156, %155 : vector<16x64xf32>
    %cst_61 = arith.constant 0.707106769 : f32
    %158 = vector.broadcast %cst_61 : f32 to vector<16x64xf32>
    %159 = arith.mulf %155, %158 : vector<16x64xf32>
    %cst_62 = arith.constant 0.000000e+00 : f32
    %160 = vector.broadcast %cst_62 : f32 to vector<16x64xf32>
    %161 = arith.cmpf oge, %159, %160 : vector<16x64xf32>
    %cst_63 = arith.constant 1.000000e+00 : f32
    %cst_64 = arith.constant -1.000000e+00 : f32
    %162 = vector.broadcast %cst_63 : f32 to vector<16x64xf32>
    %163 = vector.broadcast %cst_64 : f32 to vector<16x64xf32>
    %164 = arith.select %161, %162, %163 : vector<16x64xi1>, vector<16x64xf32>
    %165 = arith.mulf %159, %164 : vector<16x64xf32>
    %cst_65 = arith.constant 0.327591091 : f32
    %166 = vector.broadcast %cst_65 : f32 to vector<16x64xf32>
    %167 = arith.mulf %166, %165 : vector<16x64xf32>
    %cst_66 = arith.constant 1.000000e+00 : f32
    %168 = vector.broadcast %cst_66 : f32 to vector<16x64xf32>
    %169 = arith.addf %168, %167 : vector<16x64xf32>
    %cst_67 = arith.constant 1.000000e+00 : f32
    %170 = vector.broadcast %cst_67 : f32 to vector<16x64xf32>
    %171 = arith.divf %170, %169 : vector<16x64xf32>
    %cst_68 = arith.constant 1.06140542 : f32
    %172 = vector.broadcast %cst_68 : f32 to vector<16x64xf32>
    %173 = arith.mulf %172, %171 : vector<16x64xf32>
    %cst_69 = arith.constant 1.45315206 : f32
    %174 = vector.broadcast %cst_69 : f32 to vector<16x64xf32>
    %175 = arith.subf %173, %174 : vector<16x64xf32>
    %176 = arith.mulf %175, %171 : vector<16x64xf32>
    %cst_70 = arith.constant 1.42141378 : f32
    %177 = vector.broadcast %cst_70 : f32 to vector<16x64xf32>
    %178 = arith.addf %176, %177 : vector<16x64xf32>
    %179 = arith.mulf %178, %171 : vector<16x64xf32>
    %cst_71 = arith.constant 0.284496725 : f32
    %180 = vector.broadcast %cst_71 : f32 to vector<16x64xf32>
    %181 = arith.subf %179, %180 : vector<16x64xf32>
    %182 = arith.mulf %181, %171 : vector<16x64xf32>
    %cst_72 = arith.constant 0.254829586 : f32
    %183 = vector.broadcast %cst_72 : f32 to vector<16x64xf32>
    %184 = arith.addf %182, %183 : vector<16x64xf32>
    %185 = arith.mulf %184, %171 : vector<16x64xf32>
    %cst_73 = arith.constant 0.000000e+00 : f32
    %186 = vector.broadcast %cst_73 : f32 to vector<16x64xf32>
    %187 = arith.subf %186, %165 : vector<16x64xf32>
    %188 = arith.mulf %187, %165 : vector<16x64xf32>
    %189 = math.exp %188 : vector<16x64xf32>
    %190 = arith.mulf %185, %189 : vector<16x64xf32>
    %cst_74 = arith.constant 1.000000e+00 : f32
    %191 = vector.broadcast %cst_74 : f32 to vector<16x64xf32>
    %192 = arith.subf %191, %190 : vector<16x64xf32>
    %193 = arith.mulf %164, %192 : vector<16x64xf32>
    %cst_75 = arith.constant 1.000000e+00 : f32
    %194 = vector.broadcast %cst_75 : f32 to vector<16x64xf32>
    %195 = arith.addf %194, %193 : vector<16x64xf32>
    %196 = arith.mulf %157, %195 : vector<16x64xf32>
    %c5_76 = arith.constant 5 : index
    %c0_77 = arith.constant 0 : index
    %c0_78 = arith.constant 0 : index
    %197 = vector.load %arg2[%c5_76, %c0_77, %c0_78] : memref<13x64x64xf32, #tpu.memory_space<vmem>>, vector<1x64x32xf32>
    %198 = vector.shape_cast %197 : vector<1x64x32xf32> to vector<64x32xf32>
    %cst_79 = arith.constant dense<0.000000e+00> : vector<16x32xf32>
    %199 = tpu.matmul %196, %198, %cst_79 {dimension_numbers = #tpu.dot_dimension_numbers<[1], [0], [0], [1], [0, 0, 1, 1], [], []>} : vector<16x64xf32>, vector<64x32xf32>, vector<16x32xf32> -> vector<16x32xf32>
    %c9 = arith.constant 9 : index
    %c0_80 = arith.constant 0 : index
    %200 = vector.load %arg3[%c9, %c0_80] : memref<24x64xf32, #tpu.memory_space<vmem>>, vector<1x32xf32>
    %201 = vector.broadcast %200 : vector<1x32xf32> to vector<16x32xf32>
    %202 = arith.addf %199, %201 : vector<16x32xf32>
    %203 = arith.addf %202, %149 : vector<16x32xf32>
    %c10 = arith.constant 10 : index
    %c0_81 = arith.constant 0 : index
    %204 = vector.load %arg3[%c10, %c0_81] : memref<24x64xf32, #tpu.memory_space<vmem>>, vector<1x32xf32>
    %c11 = arith.constant 11 : index
    %c0_82 = arith.constant 0 : index
    %205 = vector.load %arg3[%c11, %c0_82] : memref<24x64xf32, #tpu.memory_space<vmem>>, vector<1x32xf32>
    %cst_83 = arith.constant dense<0.000000e+00> : vector<16xf32>
    %206 = vector.multi_reduction <add>, %203, %cst_83 [1] : vector<16x32xf32> to vector<16xf32>
    %207 = vector.shape_cast %206 : vector<16xf32> to vector<16x1xf32>
    %cst_84 = arith.constant 3.200000e+01 : f32
    %208 = vector.broadcast %cst_84 : f32 to vector<16x1xf32>
    %209 = arith.divf %207, %208 : vector<16x1xf32>
    %210 = vector.broadcast %209 : vector<16x1xf32> to vector<16x32xf32>
    %211 = arith.subf %203, %210 : vector<16x32xf32>
    %212 = arith.mulf %211, %211 : vector<16x32xf32>
    %cst_85 = arith.constant dense<0.000000e+00> : vector<16xf32>
    %213 = vector.multi_reduction <add>, %212, %cst_85 [1] : vector<16x32xf32> to vector<16xf32>
    %214 = vector.shape_cast %213 : vector<16xf32> to vector<16x1xf32>
    %cst_86 = arith.constant 3.200000e+01 : f32
    %215 = vector.broadcast %cst_86 : f32 to vector<16x1xf32>
    %216 = arith.divf %214, %215 : vector<16x1xf32>
    %cst_87 = arith.constant 9.99999996E-13 : f32
    %217 = vector.broadcast %cst_87 : f32 to vector<16x1xf32>
    %218 = arith.addf %216, %217 : vector<16x1xf32>
    %219 = math.rsqrt %218 : vector<16x1xf32>
    %220 = vector.broadcast %219 : vector<16x1xf32> to vector<16x32xf32>
    %221 = arith.mulf %211, %220 : vector<16x32xf32>
    %222 = vector.broadcast %204 : vector<1x32xf32> to vector<16x32xf32>
    %223 = arith.mulf %221, %222 : vector<16x32xf32>
    %224 = vector.broadcast %205 : vector<1x32xf32> to vector<16x32xf32>
    %225 = arith.addf %223, %224 : vector<16x32xf32>
    %c6_88 = arith.constant 6 : index
    %c0_89 = arith.constant 0 : index
    %c0_90 = arith.constant 0 : index
    %226 = vector.load %arg2[%c6_88, %c0_89, %c0_90] : memref<13x64x64xf32, #tpu.memory_space<vmem>>, vector<1x32x32xf32>
    %227 = vector.shape_cast %226 : vector<1x32x32xf32> to vector<32x32xf32>
    %cst_91 = arith.constant dense<0.000000e+00> : vector<16x32xf32>
    %228 = tpu.matmul %225, %227, %cst_91 {dimension_numbers = #tpu.dot_dimension_numbers<[1], [0], [0], [1], [0, 0, 1, 1], [], []>} : vector<16x32xf32>, vector<32x32xf32>, vector<16x32xf32> -> vector<16x32xf32>
    %c12 = arith.constant 12 : index
    %c0_92 = arith.constant 0 : index
    %229 = vector.load %arg3[%c12, %c0_92] : memref<24x64xf32, #tpu.memory_space<vmem>>, vector<1x32xf32>
    %230 = vector.broadcast %229 : vector<1x32xf32> to vector<16x32xf32>
    %231 = arith.addf %228, %230 : vector<16x32xf32>
    %c7_93 = arith.constant 7 : index
    %c0_94 = arith.constant 0 : index
    %c0_95 = arith.constant 0 : index
    %232 = vector.load %arg2[%c7_93, %c0_94, %c0_95] : memref<13x64x64xf32, #tpu.memory_space<vmem>>, vector<1x32x32xf32>
    %233 = vector.shape_cast %232 : vector<1x32x32xf32> to vector<32x32xf32>
    %cst_96 = arith.constant dense<0.000000e+00> : vector<16x32xf32>
    %234 = tpu.matmul %225, %233, %cst_96 {dimension_numbers = #tpu.dot_dimension_numbers<[1], [0], [0], [1], [0, 0, 1, 1], [], []>} : vector<16x32xf32>, vector<32x32xf32>, vector<16x32xf32> -> vector<16x32xf32>
    %c13 = arith.constant 13 : index
    %c0_97 = arith.constant 0 : index
    %235 = vector.load %arg3[%c13, %c0_97] : memref<24x64xf32, #tpu.memory_space<vmem>>, vector<1x32xf32>
    %236 = vector.broadcast %235 : vector<1x32xf32> to vector<16x32xf32>
    %237 = arith.addf %234, %236 : vector<16x32xf32>
    %c8_98 = arith.constant 8 : index
    %c0_99 = arith.constant 0 : index
    %c0_100 = arith.constant 0 : index
    %238 = vector.load %arg2[%c8_98, %c0_99, %c0_100] : memref<13x64x64xf32, #tpu.memory_space<vmem>>, vector<1x32x32xf32>
    %239 = vector.shape_cast %238 : vector<1x32x32xf32> to vector<32x32xf32>
    %cst_101 = arith.constant dense<0.000000e+00> : vector<16x32xf32>
    %240 = tpu.matmul %225, %239, %cst_101 {dimension_numbers = #tpu.dot_dimension_numbers<[1], [0], [0], [1], [0, 0, 1, 1], [], []>} : vector<16x32xf32>, vector<32x32xf32>, vector<16x32xf32> -> vector<16x32xf32>
    %c14 = arith.constant 14 : index
    %c0_102 = arith.constant 0 : index
    %241 = vector.load %arg3[%c14, %c0_102] : memref<24x64xf32, #tpu.memory_space<vmem>>, vector<1x32xf32>
    %242 = vector.broadcast %241 : vector<1x32xf32> to vector<16x32xf32>
    %243 = arith.addf %240, %242 : vector<16x32xf32>
    %244 = vector.broadcast %7 : vector<1x32xf32> to vector<16x32xf32>
    %245 = arith.mulf %231, %244 : vector<16x32xf32>
    %246 = vector.broadcast %14 : vector<1x32xf32> to vector<16x32xf32>
    %247 = arith.mulf %231, %246 : vector<16x32xf32>
    %248 = tpu.concatenate %245, %247 in 0 : vector<16x32xf32>, vector<16x32xf32> -> vector<32x32xf32>
    %cst_103 = arith.constant dense<0.000000e+00> : vector<32x16xf32>
    %249 = tpu.matmul %248, %237, %cst_103 {dimension_numbers = #tpu.dot_dimension_numbers<[1], [1], [0], [0], [0, 0, 1, 0], [], []>} : vector<32x32xf32>, vector<16x32xf32>, vector<32x16xf32> -> vector<32x16xf32>
    %cst_104 = arith.constant 2.500000e-01 : f32
    %250 = vector.broadcast %cst_104 : f32 to vector<32x16xf32>
    %251 = arith.mulf %249, %250 : vector<32x16xf32>
    %252 = arith.addf %251, %43 : vector<32x16xf32>
    %cst_105 = arith.constant dense<0xFF800000> : vector<32xf32>
    %253 = vector.multi_reduction <maximumf>, %252, %cst_105 [1] : vector<32x16xf32> to vector<32xf32>
    %254 = vector.shape_cast %253 : vector<32xf32> to vector<32x1xf32>
    %255 = vector.broadcast %254 : vector<32x1xf32> to vector<32x16xf32>
    %256 = arith.subf %252, %255 : vector<32x16xf32>
    %257 = math.exp %256 : vector<32x16xf32>
    %cst_106 = arith.constant dense<0.000000e+00> : vector<32xf32>
    %258 = vector.multi_reduction <add>, %257, %cst_106 [1] : vector<32x16xf32> to vector<32xf32>
    %259 = vector.shape_cast %258 : vector<32xf32> to vector<32x1xf32>
    %260 = vector.broadcast %259 : vector<32x1xf32> to vector<32x16xf32>
    %261 = arith.divf %257, %260 : vector<32x16xf32>
    %262 = vector.extract_strided_slice %261 {offsets = [0, 0], sizes = [16, 16], strides = [1, 1]} : vector<32x16xf32> to vector<16x16xf32>
    %263 = vector.broadcast %7 : vector<1x32xf32> to vector<16x32xf32>
    %264 = arith.mulf %243, %263 : vector<16x32xf32>
    %cst_107 = arith.constant dense<0.000000e+00> : vector<16x32xf32>
    %265 = tpu.matmul %262, %264, %cst_107 {dimension_numbers = #tpu.dot_dimension_numbers<[1], [0], [0], [1], [0, 0, 1, 1], [], []>} : vector<16x16xf32>, vector<16x32xf32>, vector<16x32xf32> -> vector<16x32xf32>
    %266 = vector.extract_strided_slice %261 {offsets = [16, 0], sizes = [16, 16], strides = [1, 1]} : vector<32x16xf32> to vector<16x16xf32>
    %267 = vector.broadcast %14 : vector<1x32xf32> to vector<16x32xf32>
    %268 = arith.mulf %243, %267 : vector<16x32xf32>
    %cst_108 = arith.constant dense<0.000000e+00> : vector<16x32xf32>
    %269 = tpu.matmul %266, %268, %cst_108 {dimension_numbers = #tpu.dot_dimension_numbers<[1], [0], [0], [1], [0, 0, 1, 1], [], []>} : vector<16x16xf32>, vector<16x32xf32>, vector<16x32xf32> -> vector<16x32xf32>
    %270 = arith.addf %265, %269 : vector<16x32xf32>
    %c9_109 = arith.constant 9 : index
    %c0_110 = arith.constant 0 : index
    %c0_111 = arith.constant 0 : index
    %271 = vector.load %arg2[%c9_109, %c0_110, %c0_111] : memref<13x64x64xf32, #tpu.memory_space<vmem>>, vector<1x32x32xf32>
    %272 = vector.shape_cast %271 : vector<1x32x32xf32> to vector<32x32xf32>
    %cst_112 = arith.constant dense<0.000000e+00> : vector<16x32xf32>
    %273 = tpu.matmul %270, %272, %cst_112 {dimension_numbers = #tpu.dot_dimension_numbers<[1], [0], [0], [1], [0, 0, 1, 1], [], []>} : vector<16x32xf32>, vector<32x32xf32>, vector<16x32xf32> -> vector<16x32xf32>
    %c15 = arith.constant 15 : index
    %c0_113 = arith.constant 0 : index
    %274 = vector.load %arg3[%c15, %c0_113] : memref<24x64xf32, #tpu.memory_space<vmem>>, vector<1x32xf32>
    %275 = vector.broadcast %274 : vector<1x32xf32> to vector<16x32xf32>
    %276 = arith.addf %273, %275 : vector<16x32xf32>
    %277 = arith.addf %276, %225 : vector<16x32xf32>
    %c16 = arith.constant 16 : index
    %c0_114 = arith.constant 0 : index
    %278 = vector.load %arg3[%c16, %c0_114] : memref<24x64xf32, #tpu.memory_space<vmem>>, vector<1x32xf32>
    %c17 = arith.constant 17 : index
    %c0_115 = arith.constant 0 : index
    %279 = vector.load %arg3[%c17, %c0_115] : memref<24x64xf32, #tpu.memory_space<vmem>>, vector<1x32xf32>
    %cst_116 = arith.constant dense<0.000000e+00> : vector<16xf32>
    %280 = vector.multi_reduction <add>, %277, %cst_116 [1] : vector<16x32xf32> to vector<16xf32>
    %281 = vector.shape_cast %280 : vector<16xf32> to vector<16x1xf32>
    %cst_117 = arith.constant 3.200000e+01 : f32
    %282 = vector.broadcast %cst_117 : f32 to vector<16x1xf32>
    %283 = arith.divf %281, %282 : vector<16x1xf32>
    %284 = vector.broadcast %283 : vector<16x1xf32> to vector<16x32xf32>
    %285 = arith.subf %277, %284 : vector<16x32xf32>
    %286 = arith.mulf %285, %285 : vector<16x32xf32>
    %cst_118 = arith.constant dense<0.000000e+00> : vector<16xf32>
    %287 = vector.multi_reduction <add>, %286, %cst_118 [1] : vector<16x32xf32> to vector<16xf32>
    %288 = vector.shape_cast %287 : vector<16xf32> to vector<16x1xf32>
    %cst_119 = arith.constant 3.200000e+01 : f32
    %289 = vector.broadcast %cst_119 : f32 to vector<16x1xf32>
    %290 = arith.divf %288, %289 : vector<16x1xf32>
    %cst_120 = arith.constant 9.99999996E-13 : f32
    %291 = vector.broadcast %cst_120 : f32 to vector<16x1xf32>
    %292 = arith.addf %290, %291 : vector<16x1xf32>
    %293 = math.rsqrt %292 : vector<16x1xf32>
    %294 = vector.broadcast %293 : vector<16x1xf32> to vector<16x32xf32>
    %295 = arith.mulf %285, %294 : vector<16x32xf32>
    %296 = vector.broadcast %278 : vector<1x32xf32> to vector<16x32xf32>
    %297 = arith.mulf %295, %296 : vector<16x32xf32>
    %298 = vector.broadcast %279 : vector<1x32xf32> to vector<16x32xf32>
    %299 = arith.addf %297, %298 : vector<16x32xf32>
    %c10_121 = arith.constant 10 : index
    %c0_122 = arith.constant 0 : index
    %c0_123 = arith.constant 0 : index
    %300 = vector.load %arg2[%c10_121, %c0_122, %c0_123] : memref<13x64x64xf32, #tpu.memory_space<vmem>>, vector<1x32x64xf32>
    %301 = vector.shape_cast %300 : vector<1x32x64xf32> to vector<32x64xf32>
    %cst_124 = arith.constant dense<0.000000e+00> : vector<16x64xf32>
    %302 = tpu.matmul %299, %301, %cst_124 {dimension_numbers = #tpu.dot_dimension_numbers<[1], [0], [0], [1], [0, 0, 1, 1], [], []>} : vector<16x32xf32>, vector<32x64xf32>, vector<16x64xf32> -> vector<16x64xf32>
    %c18 = arith.constant 18 : index
    %c0_125 = arith.constant 0 : index
    %303 = vector.load %arg3[%c18, %c0_125] : memref<24x64xf32, #tpu.memory_space<vmem>>, vector<1x64xf32>
    %304 = vector.broadcast %303 : vector<1x64xf32> to vector<16x64xf32>
    %305 = arith.addf %302, %304 : vector<16x64xf32>
    %cst_126 = arith.constant 5.000000e-01 : f32
    %306 = vector.broadcast %cst_126 : f32 to vector<16x64xf32>
    %307 = arith.mulf %306, %305 : vector<16x64xf32>
    %cst_127 = arith.constant 0.707106769 : f32
    %308 = vector.broadcast %cst_127 : f32 to vector<16x64xf32>
    %309 = arith.mulf %305, %308 : vector<16x64xf32>
    %cst_128 = arith.constant 0.000000e+00 : f32
    %310 = vector.broadcast %cst_128 : f32 to vector<16x64xf32>
    %311 = arith.cmpf oge, %309, %310 : vector<16x64xf32>
    %cst_129 = arith.constant 1.000000e+00 : f32
    %cst_130 = arith.constant -1.000000e+00 : f32
    %312 = vector.broadcast %cst_129 : f32 to vector<16x64xf32>
    %313 = vector.broadcast %cst_130 : f32 to vector<16x64xf32>
    %314 = arith.select %311, %312, %313 : vector<16x64xi1>, vector<16x64xf32>
    %315 = arith.mulf %309, %314 : vector<16x64xf32>
    %cst_131 = arith.constant 0.327591091 : f32
    %316 = vector.broadcast %cst_131 : f32 to vector<16x64xf32>
    %317 = arith.mulf %316, %315 : vector<16x64xf32>
    %cst_132 = arith.constant 1.000000e+00 : f32
    %318 = vector.broadcast %cst_132 : f32 to vector<16x64xf32>
    %319 = arith.addf %318, %317 : vector<16x64xf32>
    %cst_133 = arith.constant 1.000000e+00 : f32
    %320 = vector.broadcast %cst_133 : f32 to vector<16x64xf32>
    %321 = arith.divf %320, %319 : vector<16x64xf32>
    %cst_134 = arith.constant 1.06140542 : f32
    %322 = vector.broadcast %cst_134 : f32 to vector<16x64xf32>
    %323 = arith.mulf %322, %321 : vector<16x64xf32>
    %cst_135 = arith.constant 1.45315206 : f32
    %324 = vector.broadcast %cst_135 : f32 to vector<16x64xf32>
    %325 = arith.subf %323, %324 : vector<16x64xf32>
    %326 = arith.mulf %325, %321 : vector<16x64xf32>
    %cst_136 = arith.constant 1.42141378 : f32
    %327 = vector.broadcast %cst_136 : f32 to vector<16x64xf32>
    %328 = arith.addf %326, %327 : vector<16x64xf32>
    %329 = arith.mulf %328, %321 : vector<16x64xf32>
    %cst_137 = arith.constant 0.284496725 : f32
    %330 = vector.broadcast %cst_137 : f32 to vector<16x64xf32>
    %331 = arith.subf %329, %330 : vector<16x64xf32>
    %332 = arith.mulf %331, %321 : vector<16x64xf32>
    %cst_138 = arith.constant 0.254829586 : f32
    %333 = vector.broadcast %cst_138 : f32 to vector<16x64xf32>
    %334 = arith.addf %332, %333 : vector<16x64xf32>
    %335 = arith.mulf %334, %321 : vector<16x64xf32>
    %cst_139 = arith.constant 0.000000e+00 : f32
    %336 = vector.broadcast %cst_139 : f32 to vector<16x64xf32>
    %337 = arith.subf %336, %315 : vector<16x64xf32>
    %338 = arith.mulf %337, %315 : vector<16x64xf32>
    %339 = math.exp %338 : vector<16x64xf32>
    %340 = arith.mulf %335, %339 : vector<16x64xf32>
    %cst_140 = arith.constant 1.000000e+00 : f32
    %341 = vector.broadcast %cst_140 : f32 to vector<16x64xf32>
    %342 = arith.subf %341, %340 : vector<16x64xf32>
    %343 = arith.mulf %314, %342 : vector<16x64xf32>
    %cst_141 = arith.constant 1.000000e+00 : f32
    %344 = vector.broadcast %cst_141 : f32 to vector<16x64xf32>
    %345 = arith.addf %344, %343 : vector<16x64xf32>
    %346 = arith.mulf %307, %345 : vector<16x64xf32>
    %c11_142 = arith.constant 11 : index
    %c0_143 = arith.constant 0 : index
    %c0_144 = arith.constant 0 : index
    %347 = vector.load %arg2[%c11_142, %c0_143, %c0_144] : memref<13x64x64xf32, #tpu.memory_space<vmem>>, vector<1x64x32xf32>
    %348 = vector.shape_cast %347 : vector<1x64x32xf32> to vector<64x32xf32>
    %cst_145 = arith.constant dense<0.000000e+00> : vector<16x32xf32>
    %349 = tpu.matmul %346, %348, %cst_145 {dimension_numbers = #tpu.dot_dimension_numbers<[1], [0], [0], [1], [0, 0, 1, 1], [], []>} : vector<16x64xf32>, vector<64x32xf32>, vector<16x32xf32> -> vector<16x32xf32>
    %c19 = arith.constant 19 : index
    %c0_146 = arith.constant 0 : index
    %350 = vector.load %arg3[%c19, %c0_146] : memref<24x64xf32, #tpu.memory_space<vmem>>, vector<1x32xf32>
    %351 = vector.broadcast %350 : vector<1x32xf32> to vector<16x32xf32>
    %352 = arith.addf %349, %351 : vector<16x32xf32>
    %353 = arith.addf %352, %299 : vector<16x32xf32>
    %c20 = arith.constant 20 : index
    %c0_147 = arith.constant 0 : index
    %354 = vector.load %arg3[%c20, %c0_147] : memref<24x64xf32, #tpu.memory_space<vmem>>, vector<1x32xf32>
    %c21 = arith.constant 21 : index
    %c0_148 = arith.constant 0 : index
    %355 = vector.load %arg3[%c21, %c0_148] : memref<24x64xf32, #tpu.memory_space<vmem>>, vector<1x32xf32>
    %cst_149 = arith.constant dense<0.000000e+00> : vector<16xf32>
    %356 = vector.multi_reduction <add>, %353, %cst_149 [1] : vector<16x32xf32> to vector<16xf32>
    %357 = vector.shape_cast %356 : vector<16xf32> to vector<16x1xf32>
    %cst_150 = arith.constant 3.200000e+01 : f32
    %358 = vector.broadcast %cst_150 : f32 to vector<16x1xf32>
    %359 = arith.divf %357, %358 : vector<16x1xf32>
    %360 = vector.broadcast %359 : vector<16x1xf32> to vector<16x32xf32>
    %361 = arith.subf %353, %360 : vector<16x32xf32>
    %362 = arith.mulf %361, %361 : vector<16x32xf32>
    %cst_151 = arith.constant dense<0.000000e+00> : vector<16xf32>
    %363 = vector.multi_reduction <add>, %362, %cst_151 [1] : vector<16x32xf32> to vector<16xf32>
    %364 = vector.shape_cast %363 : vector<16xf32> to vector<16x1xf32>
    %cst_152 = arith.constant 3.200000e+01 : f32
    %365 = vector.broadcast %cst_152 : f32 to vector<16x1xf32>
    %366 = arith.divf %364, %365 : vector<16x1xf32>
    %cst_153 = arith.constant 9.99999996E-13 : f32
    %367 = vector.broadcast %cst_153 : f32 to vector<16x1xf32>
    %368 = arith.addf %366, %367 : vector<16x1xf32>
    %369 = math.rsqrt %368 : vector<16x1xf32>
    %370 = vector.broadcast %369 : vector<16x1xf32> to vector<16x32xf32>
    %371 = arith.mulf %361, %370 : vector<16x32xf32>
    %372 = vector.broadcast %354 : vector<1x32xf32> to vector<16x32xf32>
    %373 = arith.mulf %371, %372 : vector<16x32xf32>
    %374 = vector.broadcast %355 : vector<1x32xf32> to vector<16x32xf32>
    %375 = arith.addf %373, %374 : vector<16x32xf32>
    %376 = arith.addf %225, %375 : vector<16x32xf32>
    %377 = vector.extract_strided_slice %376 {offsets = [0, 0], sizes = [8, 32], strides = [1, 1]} : vector<16x32xf32> to vector<8x32xf32>
    %cst_154 = arith.constant dense<0xFF800000> : vector<32xf32>
    %378 = vector.multi_reduction <maximumf>, %377, %cst_154 [0] : vector<8x32xf32> to vector<32xf32>
    %379 = vector.shape_cast %378 : vector<32xf32> to vector<1x32xf32>
    %380 = vector.extract_strided_slice %376 {offsets = [8, 0], sizes = [8, 32], strides = [1, 1]} : vector<16x32xf32> to vector<8x32xf32>
    %cst_155 = arith.constant dense<0xFF800000> : vector<32xf32>
    %381 = vector.multi_reduction <maximumf>, %380, %cst_155 [0] : vector<8x32xf32> to vector<32xf32>
    %382 = vector.shape_cast %381 : vector<32xf32> to vector<1x32xf32>
    %383 = tpu.concatenate %379, %382 in 0 : vector<1x32xf32>, vector<1x32xf32> -> vector<2x32xf32>
    %c12_156 = arith.constant 12 : index
    %c0_157 = arith.constant 0 : index
    %c0_158 = arith.constant 0 : index
    %384 = vector.load %arg2[%c12_156, %c0_157, %c0_158] : memref<13x64x64xf32, #tpu.memory_space<vmem>>, vector<1x32x8xf32>
    %385 = vector.shape_cast %384 : vector<1x32x8xf32> to vector<32x8xf32>
    %cst_159 = arith.constant dense<0.000000e+00> : vector<2x8xf32>
    %386 = tpu.matmul %383, %385, %cst_159 {dimension_numbers = #tpu.dot_dimension_numbers<[1], [0], [0], [1], [0, 0, 1, 1], [], []>} : vector<2x32xf32>, vector<32x8xf32>, vector<2x8xf32> -> vector<2x8xf32>
    %c22 = arith.constant 22 : index
    %c0_160 = arith.constant 0 : index
    %387 = vector.load %arg3[%c22, %c0_160] : memref<24x64xf32, #tpu.memory_space<vmem>>, vector<1x8xf32>
    %388 = vector.broadcast %387 : vector<1x8xf32> to vector<2x8xf32>
    %389 = arith.addf %386, %388 : vector<2x8xf32>
    %c0_161 = arith.constant 0 : index
    %c0_162 = arith.constant 0 : index
    %390 = vector.load %arg4[%c0_161, %c0_162] : memref<2x8xf32, #tpu.memory_space<vmem>>, vector<2x8xf32>
    tpu.vector_store %arg4[%c0_161, %c0_162], %389 {strides = array<i32>} : memref<2x8xf32, #tpu.memory_space<vmem>>, vector<2x8xf32>,
    return
  }
}

</mosaic_0001>

<bundles_post_ra>
// kernel: torch_model_forward.1
= control target key start
LH: loop header
LB: loop body
LE: loop exit
PB: predicated region body
PF: predicated region fallthrough
CT: control target
= control target key end

     0   :  { %9 = vsyncpa [#allocation3], 0  ;;  %s3390_s0 = inlined_call_operand.vmem [shape: s32[16,1], index: 0, kind: input, shape index: {}]   ;;  %s3391_s1 = inlined_call_operand.vmem [shape: f32[48,32], index: 1, kind: input, shape index: {}]   ;;  %s3392_s2 = inlined_call_operand.hbm [shape: f32[13,64,64], index: 2, kind: input, shape index: {}]   ;;  %s3393_s3 = inlined_call_operand.vmem [shape: f32[24,64], index: 3, kind: input, shape index: {}]   ;;  %s3394_s4 = inlined_call_operand.hbm [shape: f32[2,8], index: 4, kind: output, shape index: {}]  }
   0x1   :  { %10 = vsyncpa [#allocation4], 0  ;;  %s3039_s15 = smov [#allocation2]   ;;  %s2991_s19 = scalar_lea.hbm %s3392_s2, 13312 }
   0x2   :  { %s20_s16 = sshll.u32 %s3039_s15, 4  ;;  %p2992_p0 = scmp.ne.s32.totalorder %s3392_s2, %s2991_s19  ;;  %s21_s16 = int_to_ptr.vmem [resolvable:$true] %s20_s16 }
   0x3   :  { %p2995_p1 = scmp.lt.u32.totalorder %s2991_s19, %s3392_s2 }
   0x5   :  { %p2997_p2 = pnand %p2995_p1, %p2992_p0 }
   0x7   :  { %3000 = shalt.err (!%p2997_p2)
}
   0x8   :  { %s3001_s24 = scalar_lea.vmem %s21_s16, 13312  ;;  %p3006_p4 = scmp.lt.s32.totalorder %s21_s16, %s21_s16 }
   0x9   :  { %p3002_p3 = scmp.ne.s32.totalorder %s21_s16, %s3001_s24  ;;  %p3007_p5 = scmp.lt.s32.totalorder %s3001_s24, %s3001_s24 }
   0xb   :  { %p3008_p6 = por %p3007_p5, %p3006_p4 }
   0xd   :  { %p3009_p7 = pnand %p3008_p6, %p3002_p3 }
   0xf   :  { %3012 = shalt.err (!%p3009_p7)
}
  0x10   :  { %s3040_s25 = smov 128   ;;  %s3041_s26 = smov 8  }
  0x11   :  { %26 = dma.hbm_to_vmem [thread:$0]  %s3392_s2, 13312, %s21_s16, [#allocation3], %s3040_s25, %s3040_s25, %s3041_s26  }
  0x12   :  { %3035 = dma.done.wait [#allocation3], 13312  }
  0x13   :  { %3036 = vsyncadd [#allocation3], 4294953984  ;;  %v3042_v0 = vmov 0   ;;  %v71_v1 = vld [vmem:[%s3390_s0] sm:$0xff]  ;;  %v86_v3 = vld [vmem:[%s3391_s1 + $0x8] sm:$0xff]  ;;  %v32_v9 = vlaneseq  ;;  %vm91_vm0 = vcmask 261120  }
  0x14   :  { %2922 = vset.pattern.permute.xlu0 %v3042_v0  ;;  %v85_v2 = vld [vmem:[%s3391_s1] sm:$0xff]  ;;  %v87_v4 = vld [vmem:[%s3391_s1 + $0x10] sm:$0xff]  ;;  %v88_v5 = vld [vmem:[%s3391_s1 + $0x18] sm:$0xff]  ;;  %v3043_v12 = vmov 0.0   ;;  %vm589_vm11 = vcmask 130048   ;;  %vm1092_vm14 = vcmask 523264  }
  0x15   :  { %74 = vperm.xlu0 %2922, %v71_v1   ;;  %v72_v6 = vld [vmem:[%s3390_s0 + $0x8] sm:$0xff]  ;;  %v2754_v7 = vpack.c.bf16 %v86_v3, %v85_v2  ;;  %v2758_v8 = vpack.c.bf16 %v88_v5, %v87_v4  ;;  %v3104_v10 = vand.u32 127, %v32_v9  ;;  %v89_v16 = vld [vmem:[%s3391_s1 + $0x20] sm:$0xff]  ;;  %v214_v34 = vld [vmem:[#allocation2] sm:$0xff]  ;;  %s3048_s7 = smov [#allocation5]  }
  0x16   :  { %v90_v18 = vld [vmem:[%s3391_s1 + $0x28] sm:$0xff]  ;;  %v215_v35 = vld [vmem:[#allocation2 + $0x8] sm:$0xff]  ;;  %v305_v36 = vld [vmem:[#allocation2 + $0x40] sm:$0xff]  ;;  %s2326_s8 = sshll.u32 %s3048_s7, 4  ;;  %s2327_s8 = int_to_ptr.vmem [resolvable:$true] %s2326_s8 }
  0x17   :  { %2755 = vmatprep.subr.bf16.mxu0 %v2754_v7  ;;  %v2762_v37 = vpack.c.bf16 %v215_v35, %v214_v34  ;;  %v306_v38 = vld [vmem:[#allocation2 + $0x48] sm:$0xff]  ;;  %v216_v39 = vld [vmem:[#allocation2 + $0x10] sm:$0xff]  ;;  %v217_v40 = vld [vmem:[#allocation2 + $0x18] sm:$0xff]  ;;  %vm35_vm3 = vcmp.lt.s32.totalorder %v3104_v10, 16  ;;  %vm39_vm5 = vcmp.ge.s32.totalorder %v3104_v10, 16  ;;  %vm40_vm6 = vcmp.lt.s32.totalorder %v3104_v10, 32  ;;  %p3018_p9 = scmp.lt.s32.totalorder %s2327_s8, %s2327_s8 }
  0x18   :  { %2757 = vmatpush3.bf16.msra.mxu0 %v2754_v7  ;;  %v2770_v41 = vpack.c.bf16 %v306_v38, %v305_v36  ;;  %v2766_v42 = vpack.c.bf16 %v217_v40, %v216_v39  ;;  %v307_v43 = vld [vmem:[#allocation2 + $0x50] sm:$0xff]  ;;  %v308_v44 = vld [vmem:[#allocation2 + $0x58] sm:$0xff]  ;;  %v390_v46 = vld [vmem:[#allocation2 + $0x80] sm:$0xff]  ;;  %vm63_vm8 = vcmp.ge.s32.totalorder %v3104_v10, 8  ;;  %vm53_vm9 = vcmp.lt.s32.totalorder %v3104_v10, 8  ;;  %s3013_s9 = scalar_lea.vmem %s2327_s8, 32 }
  0x19   :  { %77 = vperm.xlu0 %2922, %v72_v6   ;;  %2759 = vmatprep.subr.bf16.mxu0 %v2758_v8  ;;  %v2774_v45 = vpack.c.bf16 %v308_v44, %v307_v43  ;;  %v391_v47 = vld [vmem:[#allocation2 + $0x88] sm:$0xff]  ;;  %v2341_v56 = vld [vmem:[%s3393_s3] ss:$0 sm:$0xff]  ;;  %v2342_v58 = vld [vmem:[%s3393_s3 + $0x1] ss:$0 sm:$0xff]  ;;  %p3014_p8 = scmp.ne.s32.totalorder %s2327_s8, %s3013_s9  ;;  %p3019_p10 = scmp.lt.s32.totalorder %s3013_s9, %s3013_s9 }
  0x1a   :  { %2763 = vmatprep.subr.bf16.mxu1 %v2762_v37  ;;  %v2778_v48 = vpack.c.bf16 %v391_v47, %v390_v46  ;;  %v392_v63 = vld [vmem:[#allocation2 + $0x90] sm:$0xff]  ;;  %v393_v0 = vld [vmem:[#allocation2 + $0x98] sm:$0xff]  ;;  %vm3158_vm4 = vmpackc.low %vm91_vm0, %vm91_vm0 }
  0x1b   :  { %2765 = vmatpush3.bf16.msra.mxu1 %v2762_v37  ;;  %v2782_v3 = vpack.c.bf16 %v393_v0, %v392_v63  ;;  %v2346_v4 = vld [vmem:[%s3393_s3 + $0x3] ss:$0 sm:$0xff]  ;;  %v2343_v5 = vld [vmem:[%s3393_s3 + $0x2] ss:$0 sm:$0xff]  ;;  %vm41_vm7 = vmand %vm39_vm5, %vm40_vm6  ;;  %p3020_p11 = por %p3019_p10, %p3018_p9 }
  0x1c   :  { %2761 = vmatpush3.bf16.msra.mxu0 %v2758_v8  ;;  %2767 = vmatprep.subr.bf16.mxu1 %v2766_v42  ;;  %v3154_v8 = vsel %vm35_vm3, 1.0, %v3043_v12  ;;  %vm64_vm10 = vmand %vm63_vm8, %vm35_vm3  ;;  %vm2233_vm3 = vcmask 1040384  }
  0x1d   :  { %2771 = vmatprep.subr.bf16.mxu0 %v2770_v41  ;;  %p3021_p12 = pnand %p3020_p11, %p3014_p8 }
  0x1f   :  { %2769 = vmatpush3.bf16.msra.mxu1 %v2766_v42 }
  0x20   :  { %2779 = vmatprep.subr.bf16.mxu1 %v2778_v48 }
  0x94   :  { %v75_v11 = vpop.permute.xlu0 %74 }
  0x95   :  { %vm79_vm1 = vcmp.eq.s32.totalorder %v3104_v10, %v75_v11 }
  0x96   :  { %v2337_v13 = vsel %vm79_vm1, 1.0, %v3043_v12 }
  0x97   :  { %2544 = vmatprep.mubr.msk.f32.mxu0 %vm91_vm0, %v2337_v13 }
  0x98   :  { %v78_v14 = vpop.permute.xlu0 %77 }
  0x99   :  { %vm80_vm2 = vcmp.eq.s32.totalorder %v3104_v10, %v78_v14 }
  0x9a   :  { %v2338_v15 = vsel %vm80_vm2, 1.0, %v3043_v12  ;;  %vm3047_vm2 = vmmov 0  }
  0x9b   :  { %2545 = vmatmul.mubr.msk.f32.vlgmr.msra.gmra.mrb[0].mxu0 %vm91_vm0, %v2338_v15 }
  0x9c   :  { %2773 = vmatpush3.bf16.msra.mxu0 %v2770_v41  ;;  %v3044_v41 = vmov -1e+09  }
  0x9d   :  { %2775 = vmatprep.subr.bf16.mxu0 %v2774_v45  ;;  %v3193_v42 = vsel %vm53_vm9, 0.0, %v3044_v41  ;;  %v3196_v44 = vsel %vm64_vm10, 0.0, %v3044_v41 }
  0xa0   :  { %2777 = vmatpush3.bf16.msra.mxu0 %v2774_v45 }
 0x16e   :  { %v2546_v17 = vpop.f32.mrb[0].mxu0 }
 0x16f   :  { %v164_v19 = vpop.f32.mrb[1].mxu0  ;;  %v170_v21 = vadd.f32 %v2546_v17, %v90_v18 }
 0x170   :  { %v165_v20 = vadd.f32 %v164_v19, %v89_v16  ;;  %v2349_v19 = vld [vmem:[%s3393_s3 + $0x4] ss:$0 sm:$0xff] }
 0x171   :  { %v178_v23 = vsel %vm91_vm0, %v170_v21, 0.0 }
 0x172   :  { %v175_v22 = vsel %vm91_vm0, %v165_v20, 0.0 }
 0x173   :  { %176 = vadd.xlane.f32.xlu1 %v175_v22 }
 0x177   :  { %179 = vadd.xlane.f32.xlu1 %v178_v23 }
 0x200   :  { %v177_v24 = vpop.xlane.xlu1 %176 }
 0x201   :  { %v182_v25 = vmul.f32 0.03125, %v177_v24  ;;  %v3174_v24 = vsel %vm41_vm7, 1.0, %v3043_v12 }
 0x203   :  { %v184_v26 = vsub.f32 %v165_v20, %v182_v25 }
 0x204   :  { %v180_v27 = vpop.xlane.xlu1 %179 }
 0x205   :  { %v183_v28 = vmul.f32 0.03125, %v180_v27  ;;  %v186_v29 = vmul.f32 %v184_v26, %v184_v26 }
 0x207   :  { %v185_v30 = vsub.f32 %v170_v21, %v183_v28  ;;  %v188_v31 = vsel %vm91_vm0, %v186_v29, 0.0 }
 0x208   :  { %189 = vadd.xlane.f32.xlu0 %v188_v31 }
 0x209   :  { %v187_v32 = vmul.f32 %v185_v30, %v185_v30 }
 0x20b   :  { %v191_v33 = vsel %vm91_vm0, %v187_v32, 0.0 }
 0x20c   :  { %192 = vadd.xlane.f32.xlu1 %v191_v33 }
 0x295   :  { %v190_v49 = vpop.xlane.xlu0 %189 }
 0x296   :  { %v194_v50 = vmul.f32 0.03125, %v190_v49 }
 0x298   :  { %v196_v51 = vadd.f32 1e-12, %v194_v50 }
 0x299   :  { %v193_v52 = vpop.xlane.xlu1 %192 }
 0x29a   :  { %2923 = vrsqrt.f32 %v196_v51  ;;  %v195_v53 = vmul.f32 0.03125, %v193_v52 }
 0x29c   :  { %v197_v54 = vadd.f32 1e-12, %v195_v53 }
 0x29e   :  { %2925 = vrsqrt.f32 %v197_v54 }
 0x2a4   :  { %v2924_v55 = vpop.eup %2923 }
 0x2a5   :  { %v200_v57 = vmul.f32 %v2924_v55, %v184_v26 }
 0x2a7   :  { %v206_v59 = vmul.f32 %v2341_v56, %v200_v57 }
 0x2a8   :  { %v2926_v60 = vpop.eup %2925 }
 0x2a9   :  { %v3128_v61 = vadd.f32 %v2342_v58, %v206_v59  ;;  %v201_v62 = vmul.f32 %v2926_v60, %v185_v30 }
 0x2ab   :  { %2555 = vmatprep.mubr.msk.f32.mxu1 %vm91_vm0, %v3128_v61  ;;  %2566 = vmatprep.mubr.msk.f32.mxu0 %vm91_vm0, %v3128_v61  ;;  %v207_v1 = vmul.f32 %v2341_v56, %v201_v62 }
 0x2ad   :  { %v3134_v2 = vadd.f32 %v2342_v58, %v207_v1 }
 0x2af   :  { %2556 = vmatmul.mubr.msk.f32.vlgmr.msra.gmra.mrb[0].mxu1 %vm91_vm0, %v3134_v2  ;;  %2567 = vmatmul.mubr.msk.f32.vlgmr.msra.gmra.mrb[2].mxu0 %vm91_vm0, %v3134_v2 }
 0x2b0   :  { %2781 = vmatpush3.bf16.msra.mxu1 %v2778_v48  ;;  %2577 = vmatprep.mubr.msk.f32.mxu1 %vm91_vm0, %v3128_v61 }
 0x2b1   :  { %2783 = vmatprep.subr.bf16.mxu1 %v2782_v3 }
 0x2b4   :  { %2785 = vmatpush3.bf16.msra.mxu1 %v2782_v3 }
 0x2b7   :  { %2578 = vmatmul.mubr.msk.f32.vlgmr.msra.gmra.mrb[2].mxu1 %vm91_vm0, %v3134_v2 }
 0x382   :  { %v2557_v6 = vpop.f32.mrb[0].mxu1  ;;  %v2568_v7 = vpop.f32.mrb[2].mxu0 }
 0x383   :  { %v386_v9 = vadd.f32 %v2568_v7, %v2346_v4  ;;  %v295_v11 = vpop.f32.mrb[1].mxu1  ;;  %v380_v13 = vpop.f32.mrb[3].mxu0  ;;  %v301_v20 = vadd.f32 %v2557_v6, %v2343_v5 }
 0x384   :  { %v296_v14 = vadd.f32 %v2343_v5, %v295_v11  ;;  %v381_v15 = vadd.f32 %v2346_v4, %v380_v13 }
 0x385   :  { %v475_v28 = vmul.f32 %v3154_v8, %v301_v20  ;;  %v477_v34 = vmul.f32 %v3174_v24, %v301_v20 }
 0x386   :  { %v474_v17 = vmul.f32 %v3154_v8, %v296_v14  ;;  %v2786_v18 = vpack.c.bf16 %v386_v9, %v381_v15  ;;  %v476_v31 = vmul.f32 %v3174_v24, %v296_v14  ;;  %v801_v14 = vld [vmem:[#allocation2 + $0xc0] sm:$0xff]  ;;  %v802_v15 = vld [vmem:[#allocation2 + $0xc8] sm:$0xff] }
 0x388   :  { %2788 = vmatprep.subr.msk.bf16.mxu0 %vm3158_vm4, %v2786_v18  ;;  %2584 = vmatprep.mubr.msk.f32.mxu0 %vm91_vm0, %v474_v17  ;;  %v803_v17 = vld [vmem:[#allocation2 + $0xd0] sm:$0xff] }
 0x389   :  { %2791 = vmatpush3.bf16.xpose.msk.msra.mxu0 %vm3158_vm4, %v2786_v18  ;;  %v2800_v18 = vpack.c.bf16 %v802_v15, %v801_v14 }
 0x38a   :  { %v2579_v21 = vpop.f32.mrb[2].mxu1 }
 0x38b   :  { %v471_v22 = vadd.f32 %v2579_v21, %v2349_v19  ;;  %v465_v23 = vpop.f32.mrb[3].mxu1  ;;  %2801 = vmatprep.subr.bf16.mxu0 %v2800_v18 }
 0x38c   :  { %v466_v25 = vadd.f32 %v2349_v19, %v465_v23  ;;  %v804_v19 = vld [vmem:[#allocation2 + $0xd8] sm:$0xff] }
 0x38d   :  { %v635_v26 = vmul.f32 %v3154_v8, %v471_v22  ;;  %v637_v27 = vmul.f32 %v3174_v24, %v471_v22  ;;  %v2804_v20 = vpack.c.bf16 %v804_v19, %v803_v17  ;;  %v1080_v19 = vld [vmem:[#allocation2 + $0x148] sm:$0xff] }
 0x38e   :  { %v634_v29 = vmul.f32 %v3154_v8, %v466_v25  ;;  %v636_v30 = vmul.f32 %v3174_v24, %v466_v25 }
 0x390   :  { %2585 = vmatmul.mubr.msk.f32.vlgmr.msra.gmra.mrb[4].mxu0 %vm91_vm0, %v475_v28  ;;  %v2792_v32 = vpack.c.bf16 %v637_v27, %v636_v30  ;;  %v3183_v33 = vpack.c.bf16 %v635_v26, %v634_v29 }
 0x391   :  { %2587 = vmatprep.mubr.msk.f32.mxu0 %vm91_vm0, %v476_v31  ;;  %2803 = vmatpush3.bf16.msra.mxu0 %v2800_v18  ;;  %v1079_v18 = vld [vmem:[#allocation2 + $0x140] sm:$0xff] }
 0x392   :  { %2793 = vmatprep.subr.bf16.mxu1 %v2792_v32  ;;  %2805 = vmatprep.subr.bf16.mxu0 %v2804_v20 }
 0x393   :  { %2795 = vmatpush3.bf16.msra.mxu1 %v2792_v32 }
 0x394   :  { %2797 = vmatprep.subr.bf16.mxu1 %v3183_v33  ;;  %2588 = vmatmul.mubr.msk.f32.gmra.mrb[6].mxu0 %vm91_vm0, %v477_v34 }
 0x395   :  { %2807 = vmatpush3.bf16.msra.mxu0 %v2804_v20  ;;  %v2816_v20 = vpack.c.bf16 %v1080_v19, %v1079_v18 }
 0x397   :  { %2817 = vmatprep.subr.bf16.mxu0 %v2816_v20 }
 0x463   :  { %v2586_v35 = vpop.f32.mrb[4].mxu0 }
 0x464   :  { %v562_v36 = vpop.f32.mrb[5].mxu0  ;;  %v582_v48 = vmul.f32 0.25, %v2586_v35 }
 0x465   :  { %v581_v45 = vmul.f32 0.25, %v562_v36 }
 0x466   :  { %v586_v51 = vadd.f32 %v582_v48, %v3196_v44 }
 0x467   :  { %v2589_v37 = vpop.f32.mrb[6].mxu0  ;;  %v585_v10 = vadd.f32 %v581_v45, %v3193_v42 }
 0x468   :  { %v572_v38 = vpop.f32.mrb[7].mxu0  ;;  %v584_v39 = vmul.f32 0.25, %v2589_v37  ;;  %v593_v52 = vsel %vm589_vm11, %v586_v51, -inf  ;;  %v2362_v37 = vld [vmem:[%s3393_s3 + $0x5] ss:$0 sm:$0xff] }
 0x469   :  { %v583_v40 = vmul.f32 0.25, %v572_v38  ;;  %v590_v50 = vsel %vm589_vm11, %v585_v10, -inf }
 0x46a   :  { %v588_v47 = vadd.f32 %v584_v39, %v3196_v44 }
 0x46b   :  { %v587_v43 = vadd.f32 %v583_v40, %v3193_v42 }
 0x46c   :  { %v599_v49 = vsel %vm589_vm11, %v588_v47, -inf }
 0x46d   :  { %v596_v46 = vsel %vm589_vm11, %v587_v43, -inf }
 0x46e   :  { %597 = vmax.xlane.f32.xlu1 %v596_v46 }
 0x472   :  { %600 = vmax.xlane.f32.xlu1 %v599_v49 }
 0x476   :  { %591 = vmax.xlane.f32.xlu1 %v590_v50 }
 0x47a   :  { %594 = vmax.xlane.f32.xlu1 %v593_v52 }
 0x4fb   :  { %v598_v53 = vpop.xlane.xlu1 %597 }
 0x4fc   :  { %v604_v54 = vsub.f32 %v587_v43, %v598_v53 }
 0x4fe   :  { %v610_v55 = vmul.f32 1.442695, %v604_v54 }
 0x4ff   :  { %v601_v56 = vpop.xlane.xlu1 %600 }
 0x500   :  { %2927 = vpow2.f32 %v610_v55  ;;  %v605_v57 = vsub.f32 %v588_v47, %v601_v56  ;;  %v935_v55 = vld [vmem:[#allocation2 + $0x108] sm:$0xff] }
 0x502   :  { %v612_v58 = vmul.f32 1.442695, %v605_v57  ;;  %v936_v57 = vld [vmem:[#allocation2 + $0x110] sm:$0xff] }
 0x503   :  { %v592_v59 = vpop.xlane.xlu1 %591 }
 0x504   :  { %2929 = vpow2.f32 %v612_v58  ;;  %v602_v60 = vsub.f32 %v585_v10, %v592_v59  ;;  %v937_v58 = vld [vmem:[#allocation2 + $0x118] sm:$0xff] }
 0x505   :  { %v2812_v59 = vpack.c.bf16 %v937_v58, %v936_v57 }
 0x506   :  { %v606_v62 = vmul.f32 1.442695, %v602_v60 }
 0x507   :  { %v595_v63 = vpop.xlane.xlu1 %594 }
 0x508   :  { %2931 = vpow2.f32 %v606_v62  ;;  %v603_v0 = vsub.f32 %v586_v51, %v595_v63 }
 0x50a   :  { %v2928_v1 = vpop.eup %2927  ;;  %v608_v3 = vmul.f32 1.442695, %v603_v0 }
 0x50b   :  { %v620_v4 = vsel %vm589_vm11, %v2928_v1, 0.0 }
 0x50c   :  { %2933 = vpow2.f32 %v608_v3  ;;  %621 = vadd.xlane.f32.xlu1 %v620_v4 }
 0x50e   :  { %v2930_v5 = vpop.eup %2929 }
 0x50f   :  { %v623_v6 = vsel %vm589_vm11, %v2930_v5, 0.0 }
 0x510   :  { %624 = vadd.xlane.f32.xlu1 %v623_v6 }
 0x512   :  { %v2932_v7 = vpop.eup %2931 }
 0x513   :  { %v614_v9 = vsel %vm589_vm11, %v2932_v7, 0.0 }
 0x514   :  { %615 = vadd.xlane.f32.xlu1 %v614_v9 }
 0x516   :  { %v2934_v11 = vpop.eup %2933 }
 0x517   :  { %v617_v13 = vsel %vm589_vm11, %v2934_v11, 0.0 }
 0x518   :  { %618 = vadd.xlane.f32.xlu0 %v617_v13 }
 0x599   :  { %v622_v21 = vpop.xlane.xlu1 %621 }
 0x59a   :  { %2935 = vrcp.f32 %v622_v21  ;;  %v1081_v21 = vld [vmem:[#allocation2 + $0x150] sm:$0xff] }
 0x59d   :  { %v625_v22 = vpop.xlane.xlu1 %624 }
 0x59e   :  { %2937 = vrcp.f32 %v625_v22  ;;  %v1082_v22 = vld [vmem:[#allocation2 + $0x158] sm:$0xff] }
 0x5a1   :  { %v616_v23 = vpop.xlane.xlu1 %615 }
 0x5a2   :  { %2939 = vrcp.f32 %v616_v23  ;;  %v2820_v23 = vpack.c.bf16 %v1082_v22, %v1081_v21 }
 0x5a4   :  { %v2936_v25 = vpop.eup %2935 }
 0x5a5   :  { %v619_v26 = vpop.xlane.xlu0 %618  ;;  %v631_v27 = vmul.f32 %v2936_v25, %v2928_v1  ;;  %v1083_v25 = vld [vmem:[#allocation2 + $0x160] sm:$0xff] }
 0x5a6   :  { %2941 = vrcp.f32 %v619_v26  ;;  %v1084_v26 = vld [vmem:[#allocation2 + $0x168] sm:$0xff] }
 0x5a7   :  { %2594 = vmatprep.mubr.msk.f32.mxu1 %vm589_vm11, %v631_v27  ;;  %v2824_v27 = vpack.c.bf16 %v1084_v26, %v1083_v25 }
 0x5a8   :  { %v2938_v28 = vpop.eup %2937 }
 0x5a9   :  { %v633_v29 = vmul.f32 %v2938_v28, %v2930_v5  ;;  %v2365_v5 = vld [vmem:[%s3393_s3 + $0x6] ss:$0 sm:$0xff] }
 0x5aa   :  { %v1085_v28 = vld [vmem:[#allocation2 + $0x170] sm:$0xff] }
 0x5ab   :  { %2595 = vmatmul.mubr.msk.f32.vlgmr.msra.gmra.mrb[4].mxu1 %vm589_vm11, %v633_v29  ;;  %v1086_v29 = vld [vmem:[#allocation2 + $0x178] sm:$0xff] }
 0x5ac   :  { %v2940_v30 = vpop.eup %2939  ;;  %2799 = vmatpush3.bf16.msra.mxu1 %v3183_v33 }
 0x5ad   :  { %v627_v31 = vmul.f32 %v2940_v30, %v2932_v7  ;;  %v2828_v30 = vpack.c.bf16 %v1086_v29, %v1085_v28 }
 0x5af   :  { %2601 = vmatprep.mubr.msk.f32.mxu1 %vm589_vm11, %v627_v31  ;;  %v2367_v31 = vld [vmem:[%s3393_s3 + $0x8] ss:$0 sm:$0xff] }
 0x5b0   :  { %v2942_v32 = vpop.eup %2941 }
 0x5b1   :  { %v629_v34 = vmul.f32 %v2942_v32, %v2934_v11  ;;  %v2366_v11 = vld [vmem:[%s3393_s3 + $0x7] ss:$0 sm:$0xff] }
 0x5b3   :  { %2602 = vmatmul.mubr.msk.f32.vlgmr.msra.gmra.mrb[4].mxu1 %vm589_vm11, %v629_v34 }
 0x686   :  { %v2603_v35 = vpop.f32.mrb[4].mxu1 }
 0x687   :  { %v791_v36 = vpop.f32.mrb[5].mxu1 }
 0x688   :  { %2612 = vmatprep.mubr.msk.f32.mxu0 %vm91_vm0, %v791_v36 }
 0x689   :  { %2613 = vmatmul.mubr.msk.f32.vlgmr.msra.gmra.mrb[8].mxu0 %vm91_vm0, %v2603_v35 }
 0x68a   :  { %2819 = vmatpush3.bf16.msra.mxu0 %v2816_v20 }
 0x68b   :  { %2821 = vmatprep.subr.bf16.mxu0 %v2820_v23 }
 0x68e   :  { %2823 = vmatpush3.bf16.msra.mxu0 %v2820_v23 }
 0x68f   :  { %2825 = vmatprep.subr.bf16.mxu0 %v2824_v27 }
 0x692   :  { %2827 = vmatpush3.bf16.msra.mxu0 %v2824_v27 }
 0x693   :  { %2829 = vmatprep.subr.bf16.mxu0 %v2828_v30 }
 0x696   :  { %2831 = vmatpush3.bf16.msra.mxu0 %v2828_v30 }
 0x75c   :  { %v2614_v38 = vpop.f32.mrb[8].mxu0 }
 0x75d   :  { %v888_v39 = vadd.f32 %v2614_v38, %v2362_v37  ;;  %v882_v33 = vpop.f32.mrb[9].mxu0 }
 0x75e   :  { %v883_v40 = vadd.f32 %v2362_v37, %v882_v33 }
 0x75f   :  { %v892_v41 = vadd.f32 %v888_v39, %v3134_v2  ;;  %v3045_v39 = vmov -1.0  }
 0x760   :  { %v891_v43 = vadd.f32 %v883_v40, %v3128_v61  ;;  %v934_v61 = vld [vmem:[#allocation2 + $0x100] sm:$0xff] }
 0x761   :  { %v898_v45 = vsel %vm91_vm0, %v892_v41, 0.0  ;;  %v2808_v56 = vpack.c.bf16 %v935_v55, %v934_v61 }
 0x762   :  { %899 = vadd.xlane.f32.xlu0 %v898_v45  ;;  %v895_v46 = vsel %vm91_vm0, %v891_v43, 0.0 }
 0x763   :  { %896 = vadd.xlane.f32.xlu1 %v895_v46  ;;  %2809 = vmatprep.subr.bf16.mxu1 %v2808_v56 }
 0x764   :  { %2811 = vmatpush3.bf16.msra.mxu1 %v2808_v56 }
 0x765   :  { %2813 = vmatprep.subr.bf16.mxu1 %v2812_v59 }
 0x768   :  { %2815 = vmatpush3.bf16.msra.mxu1 %v2812_v59 }
 0x7ef   :  { %v900_v47 = vpop.xlane.xlu0 %899 }
 0x7f0   :  { %v902_v48 = vmul.f32 0.03125, %v900_v47  ;;  %v897_v49 = vpop.xlane.xlu1 %896 }
 0x7f1   :  { %v901_v10 = vmul.f32 0.03125, %v897_v49 }
 0x7f2   :  { %v904_v50 = vsub.f32 %v892_v41, %v902_v48 }
 0x7f3   :  { %v903_v51 = vsub.f32 %v891_v43, %v901_v10 }
 0x7f4   :  { %v906_v52 = vmul.f32 %v904_v50, %v904_v50 }
 0x7f5   :  { %v905_v53 = vmul.f32 %v903_v51, %v903_v51 }
 0x7f6   :  { %v910_v54 = vsel %vm91_vm0, %v906_v52, 0.0 }
 0x7f7   :  { %911 = vadd.xlane.f32.xlu0 %v910_v54  ;;  %v907_v2 = vsel %vm91_vm0, %v905_v53, 0.0 }
 0x7f8   :  { %908 = vadd.xlane.f32.xlu1 %v907_v2 }
 0x884   :  { %v912_v60 = vpop.xlane.xlu0 %911 }
 0x885   :  { %v914_v62 = vmul.f32 0.03125, %v912_v60  ;;  %v909_v63 = vpop.xlane.xlu1 %908 }
 0x886   :  { %v913_v0 = vmul.f32 0.03125, %v909_v63 }
 0x887   :  { %v916_v1 = vadd.f32 1e-12, %v914_v62 }
 0x888   :  { %v915_v3 = vadd.f32 1e-12, %v913_v0 }
 0x889   :  { %2943 = vrsqrt.f32 %v916_v1 }
 0x88a   :  { %2945 = vrsqrt.f32 %v915_v3 }
 0x893   :  { %v2944_v4 = vpop.eup %2943 }
 0x894   :  { %v2946_v6 = vpop.eup %2945  ;;  %v920_v7 = vmul.f32 %v2944_v4, %v904_v50 }
 0x895   :  { %v919_v9 = vmul.f32 %v2946_v6, %v903_v51 }
 0x896   :  { %v926_v13 = vmul.f32 %v2365_v5, %v920_v7 }
 0x897   :  { %v925_v14 = vmul.f32 %v2365_v5, %v919_v9 }
 0x898   :  { %v3233_v17 = vadd.f32 %v2366_v11, %v926_v13 }
 0x899   :  { %v3231_v15 = vadd.f32 %v2366_v11, %v925_v14 }
 0x89b   :  { %2623 = vmatprep.mubr.msk.f32.mxu1 %vm91_vm0, %v3231_v15 }
 0x89c   :  { %2624 = vmatmul.mubr.msk.f32.vlgmr.msra.gmra.mrb[6].mxu1 %vm91_vm0, %v3233_v17 }
 0x96f   :  { %v2625_v32 = vpop.f32.mrb[6].mxu1 }
 0x970   :  { %v1021_v34 = vadd.f32 %v2625_v32, %v2367_v31  ;;  %v1015_v35 = vpop.f32.mrb[7].mxu1 }
 0x971   :  { %v1016_v36 = vadd.f32 %v2367_v31, %v1015_v35  ;;  %v2374_v31 = vld [vmem:[%s3393_s3 + $0x9] ss:$0 sm:$0xff] }
 0x972   :  { %v1027_v37 = vmul.f32 0.70710677, %v1021_v34  ;;  %v1025_v28 = vmul.f32 0.5, %v1021_v34 }
 0x973   :  { %v1026_v38 = vmul.f32 0.70710677, %v1016_v36  ;;  %v1024_v26 = vmul.f32 0.5, %v1016_v36 }
 0x974   :  { %vm1029_vm12 = vcmp.ge.f32.partialorder %v1027_v37, 0.0 }
 0x975   :  { %v1031_v33 = vsel %vm1029_vm12, 1.0, %v3045_v39  ;;  %vm1028_vm13 = vcmp.ge.f32.partialorder %v1026_v38, 0.0 }
 0x976   :  { %v1033_v40 = vmul.f32 %v1031_v33, %v1027_v37  ;;  %v1030_v41 = vsel %vm1028_vm13, 1.0, %v3045_v39 }
 0x977   :  { %v1032_v43 = vmul.f32 %v1030_v41, %v1026_v38 }
 0x978   :  { %v1035_v45 = vmul.f32 0.3275911, %v1033_v40  ;;  %v1061_v49 = vsub.f32 0.0, %v1033_v40 }
 0x979   :  { %v1034_v46 = vmul.f32 0.3275911, %v1032_v43  ;;  %v1060_v10 = vsub.f32 0.0, %v1032_v43 }
 0x97a   :  { %v1037_v47 = vadd.f32 1.0, %v1035_v45  ;;  %v1063_v51 = vmul.f32 %v1061_v49, %v1033_v40 }
 0x97b   :  { %v1036_v48 = vadd.f32 1.0, %v1034_v46  ;;  %v1062_v54 = vmul.f32 %v1060_v10, %v1032_v43 }
 0x97c   :  { %2947 = vrcp.f32 %v1037_v47  ;;  %v1066_v55 = vmul.f32 1.442695, %v1063_v51  ;;  %v1218_v51 = vld [vmem:[#allocation2 + $0x188] sm:$0xff] }
 0x97d   :  { %2949 = vrcp.f32 %v1036_v48  ;;  %v1064_v58 = vmul.f32 1.442695, %v1062_v54  ;;  %v1394_v54 = vld [vmem:[#allocation2 + $0x208] sm:$0xff] }
 0x97e   :  { %2951 = vpow2.f32 %v1066_v55  ;;  %v1220_v55 = vld [vmem:[#allocation2 + $0x198] sm:$0xff] }
 0x97f   :  { %2953 = vpow2.f32 %v1064_v58  ;;  %v1396_v58 = vld [vmem:[#allocation2 + $0x218] sm:$0xff] }
 0x986   :  { %v2948_v50 = vpop.eup %2947 }
 0x987   :  { %v2950_v52 = vpop.eup %2949  ;;  %v1043_v53 = vmul.f32 1.0614054, %v2948_v50 }
 0x988   :  { %v1042_v2 = vmul.f32 1.0614054, %v2950_v52  ;;  %v2952_v11 = vpop.eup %2951 }
 0x989   :  { %v2371_v61 = vadd.f32 -1.4531521, %v1043_v53  ;;  %v2954_v14 = vpop.eup %2953  ;;  %v1393_v53 = vld [vmem:[#allocation2 + $0x200] sm:$0xff] }
 0x98a   :  { %v2370_v56 = vadd.f32 -1.4531521, %v1042_v2  ;;  %v2848_v2 = vpack.c.bf16 %v1394_v54, %v1393_v53 }
 0x98b   :  { %v1047_v57 = vmul.f32 %v2948_v50, %v2371_v61  ;;  %v1219_v61 = vld [vmem:[#allocation2 + $0x190] sm:$0xff] }
 0x98c   :  { %v1046_v59 = vmul.f32 %v2950_v52, %v2370_v56  ;;  %2849 = vmatprep.subr.bf16.mxu0 %v2848_v2  ;;  %v1395_v56 = vld [vmem:[#allocation2 + $0x210] sm:$0xff] }
 0x98d   :  { %v1049_v60 = vadd.f32 1.4214138, %v1047_v57  ;;  %v2836_v57 = vpack.c.bf16 %v1220_v55, %v1219_v61 }
 0x98e   :  { %v1048_v62 = vadd.f32 1.4214138, %v1046_v59  ;;  %v2852_v59 = vpack.c.bf16 %v1396_v58, %v1395_v56 }
 0x98f   :  { %v1051_v63 = vmul.f32 %v2948_v50, %v1049_v60  ;;  %v1308_v60 = vld [vmem:[#allocation2 + $0x1c0] sm:$0xff] }
 0x990   :  { %v1050_v0 = vmul.f32 %v2950_v52, %v1048_v62  ;;  %v1309_v62 = vld [vmem:[#allocation2 + $0x1c8] sm:$0xff] }
 0x991   :  { %v2373_v1 = vadd.f32 -0.28449672, %v1051_v63  ;;  %v2840_v63 = vpack.c.bf16 %v1309_v62, %v1308_v60 }
 0x992   :  { %v2372_v3 = vadd.f32 -0.28449672, %v1050_v0 }
 0x993   :  { %v1055_v4 = vmul.f32 %v2948_v50, %v2373_v1 }
 0x994   :  { %v1054_v5 = vmul.f32 %v2950_v52, %v2372_v3 }
 0x995   :  { %v1057_v6 = vadd.f32 0.2548296, %v1055_v4 }
 0x996   :  { %v1056_v7 = vadd.f32 0.2548296, %v1054_v5 }
 0x997   :  { %v1059_v9 = vmul.f32 %v2948_v50, %v1057_v6 }
 0x998   :  { %v1058_v13 = vmul.f32 %v2950_v52, %v1056_v7 }
 0x999   :  { %v1069_v18 = vmul.f32 %v2952_v11, %v1059_v9  ;;  %v2377_v9 = vld [vmem:[%s3393_s3 + $0xa] ss:$0 sm:$0xff] }
 0x99a   :  { %v1068_v19 = vmul.f32 %v2954_v14, %v1058_v13 }
 0x99b   :  { %v1071_v20 = vsub.f32 1.0, %v1069_v18  ;;  %v2378_v18 = vld [vmem:[%s3393_s3 + $0xb] ss:$0 sm:$0xff] }
 0x99c   :  { %v1070_v21 = vsub.f32 1.0, %v1068_v19 }
 0x99d   :  { %v1073_v22 = vmul.f32 %v1071_v20, %v1031_v33 }
 0x99e   :  { %v1072_v23 = vmul.f32 %v1070_v21, %v1030_v41  ;;  %v1310_v21 = vld [vmem:[#allocation2 + $0x1d0] sm:$0xff] }
 0x99f   :  { %v1075_v25 = vadd.f32 1.0, %v1073_v22  ;;  %v1311_v22 = vld [vmem:[#allocation2 + $0x1d8] sm:$0xff] }
 0x9a0   :  { %v1074_v27 = vadd.f32 1.0, %v1072_v23 }
 0x9a1   :  { %v1077_v30 = vmul.f32 %v1075_v25, %v1025_v28  ;;  %v2379_v28 = vld [vmem:[%s3393_s3 + $0xc] ss:$0 sm:$0xff] }
 0x9a2   :  { %v1076_v29 = vmul.f32 %v1074_v27, %v1024_v26  ;;  %v2844_v26 = vpack.c.bf16 %v1311_v22, %v1310_v21  ;;  %v2385_v27 = vld [vmem:[%s3393_s3 + $0xe] ss:$0 sm:$0xff] }
 0x9a4   :  { %2642 = vmatprep.mubr.msk.f32.mxu0 %vm1092_vm14, %v1076_v29 }
 0x9a5   :  { %2643 = vmatmul.mubr.msk.f32.vlgmr.msra.gmra.mrb[10].mxu0 %vm1092_vm14, %v1077_v30 }
 0x9a6   :  { %2851 = vmatpush3.bf16.msra.mxu0 %v2848_v2 }
 0x9a7   :  { %2853 = vmatprep.subr.bf16.mxu0 %v2852_v59 }
 0x9aa   :  { %2855 = vmatpush3.bf16.msra.mxu0 %v2852_v59 }
 0xa78   :  { %v2644_v32 = vpop.f32.mrb[10].mxu0 }
 0xa79   :  { %v1171_v35 = vadd.f32 %v2644_v32, %v2374_v31  ;;  %v1165_v37 = vpop.f32.mrb[11].mxu0 }
 0xa7a   :  { %v1166_v38 = vadd.f32 %v2374_v31, %v1165_v37 }
 0xa7b   :  { %v1175_v33 = vadd.f32 %v1171_v35, %v3233_v17 }
 0xa7c   :  { %v1174_v36 = vadd.f32 %v1166_v38, %v3231_v15  ;;  %v1217_v15 = vld [vmem:[#allocation2 + $0x180] sm:$0xff] }
 0xa7d   :  { %v1181_v34 = vsel %vm91_vm0, %v1175_v33, 0.0  ;;  %v2832_v52 = vpack.c.bf16 %v1218_v51, %v1217_v15 }
 0xa7e   :  { %1182 = vadd.xlane.f32.xlu0 %v1181_v34  ;;  %v1178_v40 = vsel %vm91_vm0, %v1174_v36, 0.0 }
 0xa7f   :  { %1179 = vadd.xlane.f32.xlu1 %v1178_v40  ;;  %2833 = vmatprep.subr.bf16.mxu1 %v2832_v52 }
 0xa80   :  { %2835 = vmatpush3.bf16.msra.mxu1 %v2832_v52 }
 0xa81   :  { %2837 = vmatprep.subr.bf16.mxu1 %v2836_v57 }
 0xa84   :  { %2839 = vmatpush3.bf16.msra.mxu1 %v2836_v57 }
 0xa85   :  { %2841 = vmatprep.subr.bf16.mxu1 %v2840_v63 }
 0xb0b   :  { %v1183_v41 = vpop.xlane.xlu0 %1182 }
 0xb0c   :  { %v1185_v43 = vmul.f32 0.03125, %v1183_v41  ;;  %v1180_v45 = vpop.xlane.xlu1 %1179 }
 0xb0d   :  { %v1184_v46 = vmul.f32 0.03125, %v1180_v45 }
 0xb0e   :  { %v1187_v47 = vsub.f32 %v1175_v33, %v1185_v43  ;;  %v2382_v43 = vld [vmem:[%s3393_s3 + $0xd] ss:$0 sm:$0xff] }
 0xb0f   :  { %v1186_v48 = vsub.f32 %v1174_v36, %v1184_v46 }
 0xb10   :  { %v1189_v49 = vmul.f32 %v1187_v47, %v1187_v47 }
 0xb11   :  { %v1188_v10 = vmul.f32 %v1186_v48, %v1186_v48 }
 0xb12   :  { %v1193_v50 = vsel %vm91_vm0, %v1189_v49, 0.0 }
 0xb13   :  { %1194 = vadd.xlane.f32.xlu0 %v1193_v50  ;;  %v1190_v17 = vsel %vm91_vm0, %v1188_v10, 0.0 }
 0xb14   :  { %1191 = vadd.xlane.f32.xlu1 %v1190_v17 }
 0xba0   :  { %v1195_v0 = vpop.xlane.xlu0 %1194 }
 0xba1   :  { %v1197_v1 = vmul.f32 0.03125, %v1195_v0  ;;  %v1192_v3 = vpop.xlane.xlu1 %1191 }
 0xba2   :  { %v1196_v4 = vmul.f32 0.03125, %v1192_v3 }
 0xba3   :  { %v1199_v5 = vadd.f32 1e-12, %v1197_v1 }
 0xba4   :  { %v1198_v6 = vadd.f32 1e-12, %v1196_v4 }
 0xba5   :  { %2955 = vrsqrt.f32 %v1199_v5 }
 0xba6   :  { %2957 = vrsqrt.f32 %v1198_v6 }
 0xbaf   :  { %v2956_v7 = vpop.eup %2955 }
 0xbb0   :  { %v2958_v11 = vpop.eup %2957  ;;  %v1203_v13 = vmul.f32 %v2956_v7, %v1187_v47 }
 0xbb1   :  { %v1202_v14 = vmul.f32 %v2958_v11, %v1186_v48 }
 0xbb2   :  { %v1209_v19 = vmul.f32 %v2377_v9, %v1203_v13 }
 0xbb3   :  { %v1208_v20 = vmul.f32 %v2377_v9, %v1202_v14 }
 0xbb4   :  { %v3263_v25 = vadd.f32 %v2378_v18, %v1209_v19 }
 0xbb5   :  { %v3261_v23 = vadd.f32 %v2378_v18, %v1208_v20 }
 0xbb7   :  { %2653 = vmatprep.mubr.msk.f32.mxu1 %vm91_vm0, %v3261_v23  ;;  %2675 = vmatprep.mubr.msk.f32.mxu0 %vm91_vm0, %v3261_v23 }
 0xbb8   :  { %2654 = vmatmul.mubr.msk.f32.vlgmr.msra.gmra.mrb[8].mxu1 %vm91_vm0, %v3263_v25  ;;  %2676 = vmatmul.mubr.msk.f32.vlgmr.msra.gmra.mrb[12].mxu0 %vm91_vm0, %v3263_v25 }
 0xbb9   :  { %2843 = vmatpush3.bf16.msra.mxu1 %v2840_v63  ;;  %2664 = vmatprep.mubr.msk.f32.mxu1 %vm91_vm0, %v3261_v23 }
 0xbba   :  { %2845 = vmatprep.subr.bf16.mxu1 %v2844_v26 }
 0xbbd   :  { %2847 = vmatpush3.bf16.msra.mxu1 %v2844_v26 }
 0xbc0   :  { %2665 = vmatmul.mubr.msk.f32.vlgmr.msra.gmra.mrb[10].mxu1 %vm91_vm0, %v3263_v25 }
 0xc8b   :  { %v2655_v29 = vpop.f32.mrb[8].mxu1  ;;  %v2677_v30 = vpop.f32.mrb[12].mxu0 }
 0xc8c   :  { %v1474_v31 = vadd.f32 %v2677_v30, %v2385_v27  ;;  %v1298_v32 = vpop.f32.mrb[9].mxu1  ;;  %v1468_v35 = vpop.f32.mrb[13].mxu0  ;;  %v1304_v17 = vadd.f32 %v2655_v29, %v2379_v28  ;;  %v1803_v29 = vld [vmem:[#allocation2 + $0x240] sm:$0xff]  ;;  %v1804_v30 = vld [vmem:[#allocation2 + $0x248] sm:$0xff] }
 0xc8d   :  { %v1299_v37 = vadd.f32 %v2379_v28, %v1298_v32  ;;  %v1469_v38 = vadd.f32 %v2385_v27, %v1468_v35  ;;  %v2870_v32 = vpack.c.bf16 %v1804_v30, %v1803_v29  ;;  %v1806_v35 = vld [vmem:[#allocation2 + $0x258] sm:$0xff]  ;;  %v2081_v30 = vld [vmem:[#allocation2 + $0x2c0] sm:$0xff] }
 0xc8e   :  { %v1637_v33 = vmul.f32 %v3154_v8, %v1474_v31  ;;  %v1639_v36 = vmul.f32 %v3174_v24, %v1474_v31  ;;  %v1478_v15 = vmul.f32 %v3154_v8, %v1304_v17  ;;  %v1480_v52 = vmul.f32 %v3174_v24, %v1304_v17  ;;  %v1805_v31 = vld [vmem:[#allocation2 + $0x250] sm:$0xff] }
 0xc8f   :  { %v1477_v34 = vmul.f32 %v3154_v8, %v1299_v37  ;;  %v1636_v40 = vmul.f32 %v3154_v8, %v1469_v38  ;;  %v1638_v41 = vmul.f32 %v3174_v24, %v1469_v38  ;;  %v1479_v51 = vmul.f32 %v3174_v24, %v1299_v37 }
 0xc90   :  { %v2874_v37 = vpack.c.bf16 %v1806_v35, %v1805_v31  ;;  %v2082_v31 = vld [vmem:[#allocation2 + $0x2c8] sm:$0xff]  ;;  %v2083_v35 = vld [vmem:[#allocation2 + $0x2d0] sm:$0xff] }
 0xc91   :  { %2682 = vmatprep.mubr.msk.f32.mxu1 %vm91_vm0, %v1477_v34  ;;  %v2862_v45 = vpack.c.bf16 %v1639_v36, %v1638_v41  ;;  %v3292_v46 = vpack.c.bf16 %v1637_v33, %v1636_v40 }
 0xc93   :  { %v2666_v47 = vpop.f32.mrb[10].mxu1  ;;  %2863 = vmatprep.subr.bf16.mxu0 %v2862_v45 }
 0xc94   :  { %v1389_v48 = vadd.f32 %v2666_v47, %v2382_v43  ;;  %v1383_v49 = vpop.f32.mrb[11].mxu1  ;;  %2865 = vmatpush3.bf16.msra.mxu0 %v2862_v45 }
 0xc95   :  { %v1384_v10 = vadd.f32 %v2382_v43, %v1383_v49  ;;  %2867 = vmatprep.subr.bf16.mxu0 %v3292_v46 }
 0xc97   :  { %v2856_v50 = vpack.c.bf16 %v1389_v48, %v1384_v10 }
 0xc99   :  { %2858 = vmatprep.subr.msk.bf16.mxu1 %vm3158_vm4, %v2856_v50 }
 0xc9a   :  { %2861 = vmatpush3.bf16.xpose.msk.msra.mxu1 %vm3158_vm4, %v2856_v50  ;;  %vm2318_vm4 = vcmask 58368  }
 0xc9b   :  { %2871 = vmatprep.subr.bf16.mxu1 %v2870_v32 }
 0xca1   :  { %2683 = vmatmul.mubr.msk.f32.vlgmr.msra.gmra.mrb[12].mxu1 %vm91_vm0, %v1478_v15  ;;  %v2398_v15 = vld [vmem:[%s3393_s3 + $0xf] ss:$0 sm:$0xff] }
 0xca2   :  { %2685 = vmatprep.mubr.msk.f32.mxu1 %vm91_vm0, %v1479_v51  ;;  %2873 = vmatpush3.bf16.msra.mxu1 %v2870_v32  ;;  %v2886_v32 = vpack.c.bf16 %v2082_v31, %v2081_v30 }
 0xca3   :  { %2875 = vmatprep.subr.bf16.mxu1 %v2874_v37 }
 0xca5   :  { %2686 = vmatmul.mubr.msk.f32.gmra.mrb[14].mxu1 %vm91_vm0, %v1480_v52 }
 0xca6   :  { %2877 = vmatpush3.bf16.msra.mxu1 %v2874_v37  ;;  %v2084_v37 = vld [vmem:[#allocation2 + $0x2d8] sm:$0xff] }
 0xca7   :  { %2887 = vmatprep.subr.bf16.mxu1 %v2886_v32 }
 0xd74   :  { %v2684_v53 = vpop.f32.mrb[12].mxu1 }
 0xd75   :  { %v1565_v54 = vpop.f32.mrb[13].mxu1  ;;  %v1585_v61 = vmul.f32 0.25, %v2684_v53 }
 0xd76   :  { %v1584_v56 = vmul.f32 0.25, %v1565_v54 }
 0xd77   :  { %v1589_v60 = vadd.f32 %v1585_v61, %v3196_v44 }
 0xd78   :  { %v2687_v2 = vpop.f32.mrb[14].mxu1  ;;  %v1588_v62 = vadd.f32 %v1584_v56, %v3193_v42 }
 0xd79   :  { %v1587_v55 = vmul.f32 0.25, %v2687_v2  ;;  %v1575_v16 = vpop.f32.mrb[15].mxu1  ;;  %v1595_v63 = vsel %vm589_vm11, %v1589_v60, -inf }
 0xd7a   :  { %v1586_v57 = vmul.f32 0.25, %v1575_v16  ;;  %v1592_v0 = vsel %vm589_vm11, %v1588_v62, -inf }
 0xd7b   :  { %v1591_v8 = vadd.f32 %v1587_v55, %v3196_v44 }
 0xd7c   :  { %v1590_v58 = vadd.f32 %v1586_v57, %v3193_v42 }
 0xd7d   :  { %v1601_v59 = vsel %vm589_vm11, %v1591_v8, -inf }
 0xd7e   :  { %1602 = vmax.xlane.f32.xlu0 %v1601_v59  ;;  %v1598_v24 = vsel %vm589_vm11, %v1590_v58, -inf }
 0xd7f   :  { %1599 = vmax.xlane.f32.xlu1 %v1598_v24 }
 0xd82   :  { %1596 = vmax.xlane.f32.xlu0 %v1595_v63 }
 0xd83   :  { %1593 = vmax.xlane.f32.xlu1 %v1592_v0  ;;  %v1936_v0 = vld [vmem:[#allocation2 + $0x280] sm:$0xff] }
 0xe0b   :  { %v1603_v1 = vpop.xlane.xlu0 %1602 }
 0xe0c   :  { %v1607_v3 = vsub.f32 %v1591_v8, %v1603_v1  ;;  %v1600_v4 = vpop.xlane.xlu1 %1599  ;;  %v1937_v1 = vld [vmem:[#allocation2 + $0x288] sm:$0xff] }
 0xe0d   :  { %v1606_v5 = vsub.f32 %v1590_v58, %v1600_v4  ;;  %v1938_v4 = vld [vmem:[#allocation2 + $0x290] sm:$0xff] }
 0xe0e   :  { %v1614_v6 = vmul.f32 1.442695, %v1607_v3  ;;  %v2878_v3 = vpack.c.bf16 %v1937_v1, %v1936_v0 }
 0xe0f   :  { %v1612_v7 = vmul.f32 1.442695, %v1606_v5  ;;  %v1597_v9 = vpop.xlane.xlu0 %1596  ;;  %v1939_v5 = vld [vmem:[#allocation2 + $0x298] sm:$0xff] }
 0xe10   :  { %2959 = vpow2.f32 %v1614_v6  ;;  %v1605_v44 = vsub.f32 %v1589_v60, %v1597_v9  ;;  %v1594_v11 = vpop.xlane.xlu1 %1593  ;;  %v2882_v6 = vpack.c.bf16 %v1939_v5, %v1938_v4 }
 0xe11   :  { %2961 = vpow2.f32 %v1612_v7  ;;  %v1604_v13 = vsub.f32 %v1588_v62, %v1594_v11 }
 0xe12   :  { %v1610_v42 = vmul.f32 1.442695, %v1605_v44 }
 0xe13   :  { %v1608_v14 = vmul.f32 1.442695, %v1604_v13 }
 0xe14   :  { %2963 = vpow2.f32 %v1610_v42 }
 0xe15   :  { %2965 = vpow2.f32 %v1608_v14 }
 0xe1a   :  { %v2960_v18 = vpop.eup %2959 }
 0xe1b   :  { %v2962_v19 = vpop.eup %2961  ;;  %v1625_v20 = vsel %vm589_vm11, %v2960_v18, 0.0 }
 0xe1c   :  { %1626 = vadd.xlane.f32.xlu0 %v1625_v20  ;;  %v1622_v21 = vsel %vm589_vm11, %v2962_v19, 0.0 }
 0xe1d   :  { %1623 = vadd.xlane.f32.xlu1 %v1622_v21 }
 0xe1e   :  { %v2964_v22 = vpop.eup %2963 }
 0xe1f   :  { %v2966_v26 = vpop.eup %2965  ;;  %v1619_v27 = vsel %vm589_vm11, %v2964_v22, 0.0 }
 0xe20   :  { %1620 = vadd.xlane.f32.xlu0 %v1619_v27  ;;  %v1616_v28 = vsel %vm589_vm11, %v2966_v26, 0.0 }
 0xe21   :  { %1617 = vadd.xlane.f32.xlu1 %v1616_v28 }
 0xea9   :  { %v1627_v38 = vpop.xlane.xlu0 %1626 }
 0xeaa   :  { %2967 = vrcp.f32 %v1627_v38  ;;  %v1624_v33 = vpop.xlane.xlu1 %1623  ;;  %v2890_v38 = vpack.c.bf16 %v2084_v37, %v2083_v35 }
 0xeab   :  { %2969 = vrcp.f32 %v1624_v33  ;;  %v2085_v33 = vld [vmem:[#allocation2 + $0x2e0] sm:$0xff] }
 0xead   :  { %v1621_v34 = vpop.xlane.xlu0 %1620 }
 0xeae   :  { %v1618_v36 = vpop.xlane.xlu1 %1617 }
 0xeaf   :  { %2971 = vrcp.f32 %v1618_v36  ;;  %v2086_v36 = vld [vmem:[#allocation2 + $0x2e8] sm:$0xff] }
 0xeb0   :  { %2973 = vrcp.f32 %v1621_v34  ;;  %v2894_v34 = vpack.c.bf16 %v2086_v36, %v2085_v33 }
 0xeb4   :  { %v2968_v40 = vpop.eup %2967 }
 0xeb5   :  { %v2970_v41 = vpop.eup %2969  ;;  %v1635_v45 = vmul.f32 %v2968_v40, %v2960_v18  ;;  %v2401_v18 = vld [vmem:[%s3393_s3 + $0x10] ss:$0 sm:$0xff]  ;;  %v2087_v40 = vld [vmem:[#allocation2 + $0x2f0] sm:$0xff] }
 0xeb6   :  { %v1633_v43 = vmul.f32 %v2970_v41, %v2962_v19  ;;  %v2088_v41 = vld [vmem:[#allocation2 + $0x2f8] sm:$0xff] }
 0xeb8   :  { %2692 = vmatprep.mubr.msk.f32.mxu0 %vm589_vm11, %v1633_v43  ;;  %v2898_v43 = vpack.c.bf16 %v2088_v41, %v2087_v40 }
 0xeb9   :  { %v2972_v47 = vpop.eup %2971  ;;  %2693 = vmatmul.mubr.msk.f32.vlgmr.msra.gmra.mrb[14].mxu0 %vm589_vm11, %v1635_v45  ;;  %v2403_v45 = vld [vmem:[%s3393_s3 + $0x12] ss:$0 sm:$0xff] }
 0xeba   :  { %2869 = vmatpush3.bf16.msra.mxu0 %v3292_v46  ;;  %v1629_v48 = vmul.f32 %v2972_v47, %v2966_v26  ;;  %v2974_v49 = vpop.eup %2973 }
 0xebb   :  { %v1631_v10 = vmul.f32 %v2974_v49, %v2964_v22  ;;  %2879 = vmatprep.subr.bf16.mxu0 %v2878_v3  ;;  %v2402_v22 = vld [vmem:[%s3393_s3 + $0x11] ss:$0 sm:$0xff] }
 0xebc   :  { %2699 = vmatprep.mubr.msk.f32.mxu0 %vm589_vm11, %v1629_v48 }
 0xec1   :  { %2700 = vmatmul.mubr.msk.f32.vlgmr.msra.gmra.mrb[14].mxu0 %vm589_vm11, %v1631_v10 }
 0xec2   :  { %2881 = vmatpush3.bf16.msra.mxu0 %v2878_v3 }
 0xec3   :  { %2883 = vmatprep.subr.bf16.mxu0 %v2882_v6 }
 0xec6   :  { %2885 = vmatpush3.bf16.msra.mxu0 %v2882_v6 }
 0xf94   :  { %v2701_v50 = vpop.f32.mrb[14].mxu0 }
 0xf95   :  { %v1793_v17 = vpop.f32.mrb[15].mxu0 }
 0xf96   :  { %2710 = vmatprep.mubr.msk.f32.mxu1 %vm91_vm0, %v1793_v17 }
 0xf97   :  { %2711 = vmatmul.mubr.msk.f32.vlgmr.msra.gmra.mrb[16].mxu1 %vm91_vm0, %v2701_v50 }
 0xf98   :  { %2889 = vmatpush3.bf16.msra.mxu1 %v2886_v32 }
 0xf99   :  { %2891 = vmatprep.subr.bf16.mxu1 %v2890_v38 }
 0xf9c   :  { %2893 = vmatpush3.bf16.msra.mxu1 %v2890_v38 }
 0xf9d   :  { %2895 = vmatprep.subr.bf16.mxu1 %v2894_v34 }
 0xfa0   :  { %2897 = vmatpush3.bf16.msra.mxu1 %v2894_v34  ;;  %v2410_v34 = vld [vmem:[%s3393_s3 + $0x13] ss:$0 sm:$0xff] }
 0xfa1   :  { %2899 = vmatprep.subr.bf16.mxu1 %v2898_v43 }
 0xfa4   :  { %2901 = vmatpush3.bf16.msra.mxu1 %v2898_v43 }
0x106a   :  { %v2712_v51 = vpop.f32.mrb[16].mxu1 }
0x106b   :  { %v1890_v52 = vadd.f32 %v2712_v51, %v2398_v15  ;;  %v1884_v46 = vpop.f32.mrb[17].mxu1 }
0x106c   :  { %v1885_v53 = vadd.f32 %v2398_v15, %v1884_v46 }
0x106d   :  { %v1894_v54 = vadd.f32 %v1890_v52, %v3263_v25 }
0x106e   :  { %v1893_v2 = vadd.f32 %v1885_v53, %v3261_v23 }
0x106f   :  { %v1900_v61 = vsel %vm91_vm0, %v1894_v54, 0.0 }
0x1070   :  { %1901 = vadd.xlane.f32.xlu0 %v1900_v61  ;;  %v1897_v55 = vsel %vm91_vm0, %v1893_v2, 0.0 }
0x1071   :  { %1898 = vadd.xlane.f32.xlu1 %v1897_v55 }
0x10fd   :  { %v1902_v16 = vpop.xlane.xlu0 %1901 }
0x10fe   :  { %v1904_v56 = vmul.f32 0.03125, %v1902_v16  ;;  %v1899_v57 = vpop.xlane.xlu1 %1898 }
0x10ff   :  { %v1903_v8 = vmul.f32 0.03125, %v1899_v57 }
0x1100   :  { %v1906_v58 = vsub.f32 %v1894_v54, %v1904_v56 }
0x1101   :  { %v1905_v59 = vsub.f32 %v1893_v2, %v1903_v8 }
0x1102   :  { %v1908_v60 = vmul.f32 %v1906_v58, %v1906_v58 }
0x1103   :  { %v1907_v24 = vmul.f32 %v1905_v59, %v1905_v59 }
0x1104   :  { %v1912_v62 = vsel %vm91_vm0, %v1908_v60, 0.0 }
0x1105   :  { %1913 = vadd.xlane.f32.xlu0 %v1912_v62  ;;  %v1909_v63 = vsel %vm91_vm0, %v1907_v24, 0.0 }
0x1106   :  { %1910 = vadd.xlane.f32.xlu1 %v1909_v63 }
0x1192   :  { %v1914_v7 = vpop.xlane.xlu0 %1913 }
0x1193   :  { %v1916_v9 = vmul.f32 0.03125, %v1914_v7  ;;  %v1911_v44 = vpop.xlane.xlu1 %1910 }
0x1194   :  { %v1915_v11 = vmul.f32 0.03125, %v1911_v44 }
0x1195   :  { %v1918_v13 = vadd.f32 1e-12, %v1916_v9 }
0x1196   :  { %v1917_v42 = vadd.f32 1e-12, %v1915_v11 }
0x1197   :  { %2975 = vrsqrt.f32 %v1918_v13 }
0x1198   :  { %2977 = vrsqrt.f32 %v1917_v42 }
0x11a1   :  { %v2976_v14 = vpop.eup %2975 }
0x11a2   :  { %v2978_v19 = vpop.eup %2977  ;;  %v1922_v20 = vmul.f32 %v2976_v14, %v1906_v58 }
0x11a3   :  { %v1921_v21 = vmul.f32 %v2978_v19, %v1905_v59 }
0x11a4   :  { %v1928_v26 = vmul.f32 %v2401_v18, %v1922_v20 }
0x11a5   :  { %v1927_v27 = vmul.f32 %v2401_v18, %v1921_v21 }
0x11a6   :  { %v3341_v29 = vadd.f32 %v2402_v22, %v1928_v26 }
0x11a7   :  { %v3339_v28 = vadd.f32 %v2402_v22, %v1927_v27 }
0x11a9   :  { %2721 = vmatprep.mubr.msk.f32.mxu0 %vm91_vm0, %v3339_v28 }
0x11aa   :  { %2722 = vmatmul.mubr.msk.f32.vlgmr.msra.gmra.mrb[16].mxu0 %vm91_vm0, %v3341_v29 }
0x11ab   :  { %2751 = vmatprep.mubr.msk.f32.mxu0 %vm3047_vm2, %v3043_v12  ;;  %v2414_v12 = vld [vmem:[%s3393_s3 + $0x15] ss:$0 sm:$0xff] }
0x127d   :  { %v2723_v47 = vpop.f32.mrb[16].mxu0 }
0x127e   :  { %v2023_v48 = vadd.f32 %v2723_v47, %v2403_v45  ;;  %v2017_v49 = vpop.f32.mrb[17].mxu0 }
0x127f   :  { %v2018_v10 = vadd.f32 %v2403_v45, %v2017_v49 }
0x1280   :  { %v2029_v50 = vmul.f32 0.70710677, %v2023_v48  ;;  %v2027_v38 = vmul.f32 0.5, %v2023_v48 }
0x1281   :  { %v2028_v17 = vmul.f32 0.70710677, %v2018_v10  ;;  %v2026_v35 = vmul.f32 0.5, %v2018_v10 }
0x1282   :  { %vm2031_vm15 = vcmp.ge.f32.partialorder %v2029_v50, 0.0 }
0x1283   :  { %v2033_v15 = vsel %vm2031_vm15, 1.0, %v3045_v39  ;;  %vm2030_vm1 = vcmp.ge.f32.partialorder %v2028_v17, 0.0 }
0x1284   :  { %v2035_v51 = vmul.f32 %v2033_v15, %v2029_v50  ;;  %v2032_v52 = vsel %vm2030_vm1, 1.0, %v3045_v39 }
0x1285   :  { %v2034_v46 = vmul.f32 %v2032_v52, %v2028_v17 }
0x1286   :  { %v2037_v53 = vmul.f32 0.3275911, %v2035_v51  ;;  %v2063_v55 = vsub.f32 0.0, %v2035_v51 }
0x1287   :  { %v2036_v54 = vmul.f32 0.3275911, %v2034_v46  ;;  %v2062_v16 = vsub.f32 0.0, %v2034_v46 }
0x1288   :  { %v2039_v2 = vadd.f32 1.0, %v2037_v53  ;;  %v2065_v57 = vmul.f32 %v2063_v55, %v2035_v51  ;;  %v2238_v55 = vld [vmem:[#allocation2 + $0x310] sm:$0xff] }
0x1289   :  { %v2038_v61 = vadd.f32 1.0, %v2036_v54  ;;  %v2064_v59 = vmul.f32 %v2062_v16, %v2034_v46  ;;  %v3046_v16 = vmov 0.0|0.0  }
0x128a   :  { %2979 = vrcp.f32 %v2039_v2  ;;  %v2068_v62 = vmul.f32 1.442695, %v2065_v57  ;;  %2902 = vmatprep.subr.bf16.mxu0 %v3046_v16  ;;  %v2239_v57 = vld [vmem:[#allocation2 + $0x318] sm:$0xff] }
0x128b   :  { %2981 = vrcp.f32 %v2038_v61  ;;  %v2066_v39 = vmul.f32 1.442695, %v2064_v59  ;;  %v2237_v61 = vld [vmem:[#allocation2 + $0x308] sm:$0xff] }
0x128c   :  { %2983 = vpow2.f32 %v2068_v62 }
0x128d   :  { %2985 = vpow2.f32 %v2066_v39  ;;  %v2413_v39 = vld [vmem:[%s3393_s3 + $0x14] ss:$0 sm:$0xff] }
0x1294   :  { %v2980_v56 = vpop.eup %2979 }
0x1295   :  { %v2982_v8 = vpop.eup %2981  ;;  %v2045_v58 = vmul.f32 1.0614054, %v2980_v56 }
0x1296   :  { %v2044_v60 = vmul.f32 1.0614054, %v2982_v8  ;;  %v2984_v18 = vpop.eup %2983 }
0x1297   :  { %v2407_v24 = vadd.f32 -1.4531521, %v2045_v58  ;;  %v2986_v20 = vpop.eup %2985 }
0x1298   :  { %v2406_v63 = vadd.f32 -1.4531521, %v2044_v60 }
0x1299   :  { %v2049_v0 = vmul.f32 %v2980_v56, %v2407_v24 }
0x129a   :  { %v2048_v1 = vmul.f32 %v2982_v8, %v2406_v63 }
0x129b   :  { %v2051_v3 = vadd.f32 1.4214138, %v2049_v0 }
0x129c   :  { %v2050_v4 = vadd.f32 1.4214138, %v2048_v1 }
0x129d   :  { %v2053_v5 = vmul.f32 %v2980_v56, %v2051_v3 }
0x129e   :  { %v2052_v6 = vmul.f32 %v2982_v8, %v2050_v4 }
0x129f   :  { %v2409_v7 = vadd.f32 -0.28449672, %v2053_v5 }
0x12a0   :  { %v2408_v9 = vadd.f32 -0.28449672, %v2052_v6 }
0x12a1   :  { %v2057_v44 = vmul.f32 %v2980_v56, %v2409_v7 }
0x12a2   :  { %v2056_v11 = vmul.f32 %v2982_v8, %v2408_v9 }
0x12a3   :  { %v2059_v13 = vadd.f32 0.2548296, %v2057_v44 }
0x12a4   :  { %v2058_v42 = vadd.f32 0.2548296, %v2056_v11 }
0x12a5   :  { %v2061_v14 = vmul.f32 %v2980_v56, %v2059_v13 }
0x12a6   :  { %v2060_v19 = vmul.f32 %v2982_v8, %v2058_v42  ;;  %v2906_v8 = vpack.c.bf16 %v2239_v57, %v2238_v55 }
0x12a7   :  { %v2071_v21 = vmul.f32 %v2984_v18, %v2061_v14 }
0x12a8   :  { %v2070_v22 = vmul.f32 %v2986_v20, %v2060_v19 }
0x12a9   :  { %v2073_v26 = vsub.f32 1.0, %v2071_v21 }
0x12aa   :  { %v2072_v27 = vsub.f32 1.0, %v2070_v22 }
0x12ab   :  { %v2075_v30 = vmul.f32 %v2073_v26, %v2033_v15 }
0x12ac   :  { %v2074_v31 = vmul.f32 %v2072_v27, %v2032_v52 }
0x12ad   :  { %v2077_v32 = vadd.f32 1.0, %v2075_v30 }
0x12ae   :  { %v2076_v37 = vadd.f32 1.0, %v2074_v31 }
0x12af   :  { %v2079_v36 = vmul.f32 %v2077_v32, %v2027_v38 }
0x12b0   :  { %v2078_v33 = vmul.f32 %v2076_v37, %v2026_v35 }
0x12b2   :  { %2740 = vmatprep.mubr.msk.f32.mxu1 %vm1092_vm14, %v2078_v33 }
0x12b3   :  { %2741 = vmatmul.mubr.msk.f32.vlgmr.msra.gmra.mrb[18].mxu1 %vm1092_vm14, %v2079_v36 }
0x1386   :  { %v2742_v40 = vpop.f32.mrb[18].mxu1 }
0x1387   :  { %v2172_v41 = vadd.f32 %v2742_v40, %v2410_v34  ;;  %v2166_v43 = vpop.f32.mrb[19].mxu1 }
0x1388   :  { %v2167_v45 = vadd.f32 %v2410_v34, %v2166_v43 }
0x1389   :  { %v2176_v47 = vadd.f32 %v2172_v41, %v3341_v29 }
0x138a   :  { %v2175_v49 = vadd.f32 %v2167_v45, %v3339_v28  ;;  %v2236_v28 = vld [vmem:[#allocation2 + $0x300] sm:$0xff] }
0x138b   :  { %v2182_v48 = vsel %vm91_vm0, %v2176_v47, 0.0  ;;  %v2903_v56 = vpack.c.bf16 %v2237_v61, %v2236_v28 }
0x138c   :  { %2183 = vadd.xlane.f32.xlu0 %v2182_v48  ;;  %v2179_v10 = vsel %vm91_vm0, %v2175_v49, 0.0 }
0x138d   :  { %2180 = vadd.xlane.f32.xlu1 %v2179_v10  ;;  %2904 = vmatpush3.bf16.msra.mxu0 %v2903_v56 }
0x138e   :  { %2905 = vmatprep.subr.bf16.mxu0 %v3046_v16 }
0x1391   :  { %2907 = vmatpush3.bf16.msra.mxu0 %v2906_v8 }
0x1419   :  { %v2184_v50 = vpop.xlane.xlu0 %2183 }
0x141a   :  { %v2186_v17 = vmul.f32 0.03125, %v2184_v50  ;;  %v2181_v15 = vpop.xlane.xlu1 %2180 }
0x141b   :  { %v2185_v51 = vmul.f32 0.03125, %v2181_v15 }
0x141c   :  { %v2188_v52 = vsub.f32 %v2176_v47, %v2186_v17 }
0x141d   :  { %v2187_v46 = vsub.f32 %v2175_v49, %v2185_v51 }
0x141e   :  { %v2190_v53 = vmul.f32 %v2188_v52, %v2188_v52 }
0x141f   :  { %v2189_v54 = vmul.f32 %v2187_v46, %v2187_v46 }
0x1420   :  { %v2194_v2 = vsel %vm91_vm0, %v2190_v53, 0.0 }
0x1421   :  { %2195 = vadd.xlane.f32.xlu0 %v2194_v2  ;;  %v2191_v29 = vsel %vm91_vm0, %v2189_v54, 0.0 }
0x1422   :  { %2192 = vadd.xlane.f32.xlu1 %v2191_v29 }
0x14ae   :  { %v2196_v58 = vpop.xlane.xlu0 %2195 }
0x14af   :  { %v2198_v59 = vmul.f32 0.03125, %v2196_v58  ;;  %v2193_v60 = vpop.xlane.xlu1 %2192 }
0x14b0   :  { %v2197_v24 = vmul.f32 0.03125, %v2193_v60 }
0x14b1   :  { %v2200_v62 = vadd.f32 1e-12, %v2198_v59 }
0x14b2   :  { %v2199_v63 = vadd.f32 1e-12, %v2197_v24 }
0x14b3   :  { %2987 = vrsqrt.f32 %v2200_v62 }
0x14b4   :  { %2989 = vrsqrt.f32 %v2199_v63 }
0x14bd   :  { %v2988_v0 = vpop.eup %2987 }
0x14be   :  { %v2990_v1 = vpop.eup %2989  ;;  %v2204_v3 = vmul.f32 %v2988_v0, %v2188_v52 }
0x14bf   :  { %v2203_v4 = vmul.f32 %v2990_v1, %v2187_v46 }
0x14c0   :  { %v2210_v5 = vmul.f32 %v2413_v39, %v2204_v3 }
0x14c1   :  { %v2209_v6 = vmul.f32 %v2413_v39, %v2203_v4 }
0x14c2   :  { %v2216_v7 = vadd.f32 %v2414_v12, %v2210_v5 }
0x14c3   :  { %v2215_v9 = vadd.f32 %v2414_v12, %v2209_v6 }
0x14c4   :  { %v2218_v44 = vadd.f32 %v2216_v7, %v3263_v25 }
0x14c5   :  { %v2217_v11 = vadd.f32 %v2215_v9, %v3261_v23  ;;  %v2415_v23 = vld [vmem:[%s3393_s3 + $0x16] ss:$0 sm:$0xff] }
0x14c6   :  { %v2226_v13 = vsel %vm91_vm0, %v2218_v44, -inf }
0x14c7   :  { %v2219_v42 = vsel %vm91_vm0, %v2217_v11, -inf  ;;  %v2227_v14 = vrot.slane %v2226_v13, 4 }
0x14c8   :  { %v2220_v18 = vrot.slane %v2219_v42, 4 }
0x14c9   :  { %v2228_v19 = vmax.f32 %v2226_v13, %v2227_v14 }
0x14ca   :  { %v2221_v20 = vmax.f32 %v2219_v42, %v2220_v18 }
0x14cb   :  { %v2229_v21 = vrot.slane %v2228_v19, 2 }
0x14cc   :  { %v2222_v22 = vrot.slane %v2221_v20, 2 }
0x14cd   :  { %v2230_v26 = vmax.f32 %v2228_v19, %v2229_v21 }
0x14ce   :  { %v2223_v27 = vmax.f32 %v2221_v20, %v2222_v22 }
0x14cf   :  { %v2231_v30 = vrot.slane %v2230_v26, 1 }
0x14d0   :  { %v2224_v31 = vrot.slane %v2223_v27, 1 }
0x14d1   :  { %v2232_v32 = vmax.f32 %v2230_v26, %v2231_v30 }
0x14d2   :  { %v2225_v35 = vmax.f32 %v2223_v27, %v2224_v31 }
0x14d4   :  { %v2234_v25 = vsel %vm2233_vm3, %v2225_v35, %v2232_v32 }
0x14d5   :  { %2752 = vmatmul.mubr.msk.f32.vlgmr.msra.gmra.mrb[18].mxu0 %vm91_vm0, %v2234_v25 }
0x15a8   :  { %v2314_v37 = vpop.f32.mrb[18].mxu0 }
0x15a9   :  { %v2315_v38 = vadd.f32 %v2415_v23, %v2314_v37  ;;  %v2753_v33 = vpop.f32.mrb[19].mxu0 }
0x15ab   :  { %2319 = vst.msk [vmem:[#allocation5] sm:$0x3] %vm2318_vm4, %v2315_v38 }
0x15ac   :  { %3024 = shalt.err (!%p3021_p12)
}
0x15ad   :  { %s3025_s11 = scalar_lea.hbm %s3394_s4, 32 }
0x15ae   :  { %p3026_p13 = scmp.ne.s32.totalorder %s3394_s4, %s3025_s11  ;;  %p3029_p0 = scmp.lt.u32.totalorder %s3025_s11, %s3394_s4 }
0x15b0   :  { %p3031_p1 = pnand %p3029_p0, %p3026_p13 }
0x15b2   :  { %3034 = shalt.err (!%p3031_p1)
}
0x15b3   :  { %2329 = dma.vmem_to_hbm [thread:$0]  %s2327_s8, 32, %s3394_s4, [#allocation4]  }
0x15b4   :  { %3037 = dma.done.wait [#allocation4], 32  }
0x15b5   :  { %3038 = vsyncadd [#allocation4], 4294967264 }
0x15b6   :  { %2333 = vsyncpa [#allocation3], 1 }
0x15b7   :  { %2334 = vsyncpa [#allocation4], 1 }

</bundles_post_ra>
